<compile_context>
chip_gen: v5e
topology: v5e:2x2
jax: 0.10.0
libtpu: 0.0.40
codegen_flags: <defaults>
</compile_context>

<pallas_src>
from functools import partial

import jax
import jax.numpy as jnp
from jax.experimental import pallas as pl
from jax.experimental.pallas import tpu as pltpu


def cross_attn_kernel(q_ref, kv_ref, wqkv_ref, wproj_ref, bproj_ref, o_ref,
                      kh_ref, vh_ref, *, num_heads, scale, cache_kv,
                      approx_recip):
    dtype = q_ref.dtype
    C = q_ref.shape[-1]
    dh = C // num_heads
    nkv = kv_ref.shape[1]

    def project_kv():
        kv = kv_ref[0]                                  # (Nkv, C)
        # Fused K+V projection: one MXU pass over the shared LHS.
        w_kv = wqkv_ref[:, C:3 * C]                     # (C, 2C) static slice
        kv_p = jnp.dot(kv, w_kv, preferred_element_type=jnp.float32)  # (Nkv, 2C)
        k_p = kv_p[:, :C].astype(dtype)
        v_p = kv_p[:, C:].astype(dtype)
        # Head-batched layout, written once into scratch: (Nkv,C)->(H,Nkv,Dh).
        kh_ref[...] = jnp.transpose(k_p.reshape(nkv, num_heads, dh), (1, 0, 2))
        vh_ref[...] = jnp.transpose(v_p.reshape(nkv, num_heads, dh), (1, 0, 2))

    if cache_kv:
        # q-tile axis is serial ("arbitrary"): project K/V only on the first
        # tile of each batch element, reuse from scratch afterwards.
        @pl.when(pl.program_id(1) == 0)
        def _():
            project_kv()
    else:
        # q-tile axis is core-parallel: each tile recomputes K/V.
        project_kv()

    q = q_ref[0]                                        # (TQ, C)
    tq = q.shape[0]
    w_q = wqkv_ref[:, 0:C]                              # Q third only
    # Scale folded into the f32->compute-dtype cast of q_p.
    q_p = (jnp.dot(q, w_q, preferred_element_type=jnp.float32)
           * scale).astype(dtype)
    qh = jnp.transpose(q_p.reshape(tq, num_heads, dh), (1, 0, 2))   # (H,TQ,Dh)

    kh = kh_ref[...]                                    # (H, Nkv, Dh)
    vh = vh_ref[...]                                    # (H, Nkv, Dh)

    # Scores + softmax in f32; contraction over the last dims (no explicit
    # K transpose materialized).
    s = jnp.einsum("hqd,hkd->hqk", qh, kh, preferred_element_type=jnp.float32)
    s = s - jnp.max(s, axis=-1, keepdims=True)
    p = jnp.exp(s)
    denom = jnp.sum(p, axis=-1, keepdims=True)
    if approx_recip:
        p = p * pl.reciprocal(denom, approx=True)       # EUP slot, ~free
    else:
        p = p / denom                                   # exact for f32 compute

    # Weighted values; back to (TQ, C) == torch `.transpose(1,2).reshape`.
    out_h = jnp.einsum("hqk,hkd->hqd", p.astype(dtype), vh,
                       preferred_element_type=jnp.float32)          # (H,TQ,Dh)
    out = jnp.transpose(out_h, (1, 0, 2)).reshape(tq, C).astype(dtype)

    # Output projection + bias.
    x = jnp.dot(out, wproj_ref[...], preferred_element_type=jnp.float32)
    x = x + bproj_ref[...].astype(jnp.float32)
    o_ref[0] = x.astype(o_ref.dtype)


def _num_tensorcores_per_chip():
    # v5e / v6e expose one TensorCore per chip, v7x exposes two.
    try:
        kind = jax.devices()[0].device_kind.lower()
    except Exception:
        return 1
    return 2 if "v7" in kind else 1


def _vmem_limit_bytes():
    # Generation-aware VMEM budget: ~3/4 of physical capacity, capped.
    # (v7x: 64 MiB physical -> 48 MiB; v5e/v6e: 128 MiB -> 96 MiB.)
    try:
        cap = int(getattr(pltpu.get_tpu_info(), "vmem_capacity_bytes"))
    except Exception:
        cap = 64 * 1024 * 1024
    return max(32 * 1024 * 1024, min((cap * 3) // 4, 96 * 1024 * 1024))


def _pick_block_q(nq):
    # Single-TC chips: tiling Nq is pure per-step overhead, so take the whole
    # query length in one tile unless it is very large (VMEM bound).
    if nq <= 1024:
        return nq
    for cand in (1024, 512, 256, 128):
        if nq % cand == 0:
            return cand
    return nq


def cross_attention(q, kv, w_qkv, w_proj, b_proj, *, num_heads,
                    block_q=None, compute_dtype=jnp.bfloat16):
    B, Nq, C = q.shape
    _, Nkv, _ = kv.shape
    assert C % num_heads == 0
    dh = C // num_heads
    scale = dh ** (-0.5)
    out_dtype = q.dtype

    # MXU operand dtype (f32 accumulation inside the kernel regardless).
    cd = jnp.dtype(q.dtype) if compute_dtype is None else jnp.dtype(compute_dtype)
    qc = q.astype(cd)
    kvc = kv.astype(cd)
    wqkvc = w_qkv.astype(cd)
    wprojc = w_proj.astype(cd)
    bprojc = b_proj.astype(cd)

    n_tc = _num_tensorcores_per_chip()

    if block_q is None:
        block_q = _pick_block_q(Nq)
        # Dual-TC chips (v7x): make sure B * q_tiles >= #cores so no core idles.
        if B * (Nq // block_q) < n_tc and block_q % 16 == 0:
            block_q //= 2
    assert Nq % block_q == 0
    q_tiles = Nq // block_q

    # Policy: either cache the K/V projection across a serial q-tile axis, or
    # (when B alone cannot feed both cores) shard the q-tile axis and accept
    # the per-tile K/V recompute.
    parallel_q = (B < n_tc) and (q_tiles >= 2)
    cache_kv = not parallel_q

    kernel = partial(cross_attn_kernel, num_heads=num_heads, scale=scale,
                     cache_kv=cache_kv, approx_recip=(cd != jnp.float32))

    flops = 2 * B * (Nq * C * C            # Q projection
                     + Nkv * C * 2 * C     # fused K/V projection
                     + 2 * Nq * Nkv * C    # QK^T + PV
                     + Nq * C * C)         # output projection
    bytes_accessed = int(
        (qc.size + kvc.size + wqkvc.size + wprojc.size + bprojc.size)
        * cd.itemsize + B * Nq * C * jnp.dtype(out_dtype).itemsize)
    cost = pl.CostEstimate(flops=flops,
                           transcendentals=B * num_heads * Nq * Nkv,
                           bytes_accessed=bytes_accessed)

    def build_and_run(weight_mode):
        def const2d(shape):
            # Constant-index operands (weights / bias).
            if weight_mode is None:
                return pl.BlockSpec(shape, lambda b, t: (0, 0))
            return pl.BlockSpec(shape, lambda b, t: (0, 0),
                                pipeline_mode=weight_mode)

        return pl.pallas_call(
            kernel,
            out_shape=jax.ShapeDtypeStruct((B, Nq, C), out_dtype),
            grid_spec=pltpu.PrefetchScalarGridSpec(
                num_scalar_prefetch=0,
                grid=(B, q_tiles),
                in_specs=[
                    pl.BlockSpec((1, block_q, C), lambda b, t: (b, t, 0)),  # q tile
                    pl.BlockSpec((1, Nkv, C), lambda b, t: (b, 0, 0)),      # kv (full)
                    const2d((C, 3 * C)),                                    # qkv W
                    const2d((C, C)),                                        # proj W
                    const2d((1, C)),                                        # proj b
                ],
                out_specs=pl.BlockSpec((1, block_q, C), lambda b, t: (b, t, 0)),
                scratch_shapes=[
                    pltpu.VMEM((num_heads, Nkv, dh), cd),   # cached K heads
                    pltpu.VMEM((num_heads, Nkv, dh), cd),   # cached V heads
                ],
            ),
            compiler_params=pltpu.CompilerParams(
                dimension_semantics=("parallel",
                                     "parallel" if parallel_q else "arbitrary"),
                vmem_limit_bytes=_vmem_limit_bytes(),
            ),
            cost_estimate=cost,
        )(qc, kvc, wqkvc, wprojc, bprojc)

    try:
        # Single-buffer the constant weight/bias operands (pure VMEM saving:
        # their index_map never changes), important on v7x's 64 MiB VMEM.
        return build_and_run(pl.Buffered(buffer_count=1))
    except Exception:
        # Backend without pipeline_mode / Buffered(1) support: default buffering.
        return build_and_run(None)


def cross_attention_ref(q, kv, w_qkv, w_proj, b_proj, *, num_heads):
    """Pure-JAX reference mirroring the PyTorch forward (f32 math)."""
    q = q.astype(jnp.float32)
    kv = kv.astype(jnp.float32)
    w_qkv = w_qkv.astype(jnp.float32)
    w_proj = w_proj.astype(jnp.float32)
    b_proj = b_proj.astype(jnp.float32)

    B, Nq, C = q.shape
    _, Nkv, _ = kv.shape
    Dh = C // num_heads
    scale = Dh ** (-0.5)

    kv_qkv = (kv @ w_qkv).reshape(B, Nkv, 3, num_heads, Dh).transpose(2, 0, 3, 1, 4)
    _, k, v = kv_qkv[0], kv_qkv[1], kv_qkv[2]
    q_qkv = (q @ w_qkv).reshape(B, Nq, 3, num_heads, Dh).transpose(2, 0, 3, 1, 4)
    qh = q_qkv[0]

    attn = jnp.einsum("bhqd,bhkd->bhqk", qh, k) * scale
    attn = jax.nn.softmax(attn, axis=-1)
    x = jnp.einsum("bhqk,bhkd->bhqd", attn, v)
    x = x.transpose(0, 2, 1, 3).reshape(B, Nq, C)
    return x @ w_proj + b_proj[0]


if __name__ == "__main__":
    B, Nq, Nkv, C, H = 2, 8, 16, 32, 4

    key = jax.random.PRNGKey(0)
    k1, k2, k3, k4, k5 = jax.random.split(key, 5)

    q = jax.random.normal(k1, (B, Nq, C), dtype=jnp.float32)
    kv = jax.random.normal(k2, (B, Nkv, C), dtype=jnp.float32)

    # Parameters stored as (in, out): nn.Linear(dim, 3*dim, bias=False), nn.Linear(dim, dim).
    w_qkv = jax.random.normal(k3, (C, 3 * C), dtype=jnp.float32) * 0.05
    w_proj = jax.random.normal(k4, (C, C), dtype=jnp.float32) * 0.05
    b_proj = jax.random.normal(k5, (1, C), dtype=jnp.float32) * 0.05

    ref = cross_attention_ref(q, kv, w_qkv, w_proj, b_proj, num_heads=H)

    # 1) Exact f32 compute path (single q tile, exact softmax reciprocal).
    out_f32 = jax.block_until_ready(
        cross_attention(q, kv, w_qkv, w_proj, b_proj, num_heads=H,
                        compute_dtype=jnp.float32))
    assert out_f32.shape == (B, Nq, C)
    assert jnp.allclose(out_f32, ref, atol=5e-3, rtol=5e-3), "f32 mismatch"

    # 2) Default fast path for f32 callers: bf16 MXU operands, f32 accumulation.
    out_fast = jax.block_until_ready(
        cross_attention(q, kv, w_qkv, w_proj, b_proj, num_heads=H))
    assert out_fast.shape == (B, Nq, C)
    assert jnp.allclose(out_fast.astype(jnp.float32), ref, atol=5e-2, rtol=5e-2), \
        "bf16-compute mismatch"

    # 3) Tiled q axis (exercises the cached-K/V scratch + pl.when path).
    Nq2 = 16
    q2 = jax.random.normal(k1, (B, Nq2, C), dtype=jnp.float32)
    ref2 = cross_attention_ref(q2, kv, w_qkv, w_proj, b_proj, num_heads=H)
    out_tiled = jax.block_until_ready(
        cross_attention(q2, kv, w_qkv, w_proj, b_proj, num_heads=H,
                        block_q=8, compute_dtype=jnp.float32))
    assert out_tiled.shape == (B, Nq2, C)
    assert jnp.allclose(out_tiled, ref2, atol=5e-3, rtol=5e-3), "tiled mismatch"

    # 4) Native bf16 inputs / bf16 output.
    bf16 = lambda x: x.astype(jnp.bfloat16)
    out_bf16 = jax.block_until_ready(
        cross_attention(bf16(q), bf16(kv), bf16(w_qkv), bf16(w_proj), bf16(b_proj),
                        num_heads=H))
    assert out_bf16.shape == (B, Nq, C) and out_bf16.dtype == jnp.bfloat16
    assert jnp.allclose(out_bf16.astype(jnp.float32), ref, atol=5e-2, rtol=5e-2), \
        "bf16-input mismatch"

    print("KERNEL_OK")
</pallas_src>

<mosaic_0001>
module attributes {stable_mosaic.version = 11 : i64} {
  func.func @cross_attn_kernel(%arg0: i32, %arg1: i32, %arg2: memref<1x8x32xf32, #tpu.memory_space<vmem>>, %arg3: memref<1x16x32xf32, #tpu.memory_space<vmem>>, %arg4: memref<32x96xf32, #tpu.memory_space<vmem>>, %arg5: memref<32x32xf32, #tpu.memory_space<vmem>>, %arg6: memref<1x32xf32, #tpu.memory_space<vmem>>, %arg7: memref<1x8x32xf32, #tpu.memory_space<vmem>>, %arg8: memref<4x16x8xf32, #tpu.memory_space<vmem>>, %arg9: memref<4x16x8xf32, #tpu.memory_space<vmem>>) attributes {dimension_semantics = [#tpu.dimension_semantics<parallel>, #tpu.dimension_semantics<arbitrary>], iteration_bounds = array<i64: 2, 1>, scalar_prefetch = 0 : i64, scratch_operands = 2 : i64, tpu.core_type = #tpu.core_type<tc>, window_params = [{transform_indices = @transform_0, window_bounds = array<i64: 1, 8, 32>}, {transform_indices = @transform_1, window_bounds = array<i64: 1, 16, 32>}, {pipeline_mode = #tpu.pipeline_mode<synchronous>, transform_indices = @transform_2, window_bounds = array<i64: 32, 96>}, {pipeline_mode = #tpu.pipeline_mode<synchronous>, transform_indices = @transform_3, window_bounds = array<i64: 32, 32>}, {pipeline_mode = #tpu.pipeline_mode<synchronous>, transform_indices = @transform_4, window_bounds = array<i64: 1, 32>}, {transform_indices = @transform_5, window_bounds = array<i64: 1, 8, 32>}]} {
    %c0_i32 = arith.constant 0 : i32
    %0 = arith.cmpi eq, %arg1, %c0_i32 : i32
    %1 = arith.extui %0 : i1 to i32
    %c0_i32_0 = arith.constant 0 : i32
    %2 = arith.cmpi ne, %1, %c0_i32_0 : i32
    scf.if %2 {
      %c0_24 = arith.constant 0 : index
      %c0_25 = arith.constant 0 : index
      %c0_26 = arith.constant 0 : index
      %34 = vector.load %arg3[%c0_24, %c0_25, %c0_26] : memref<1x16x32xf32, #tpu.memory_space<vmem>>, vector<1x16x32xf32>
      %35 = vector.shape_cast %34 : vector<1x16x32xf32> to vector<16x32xf32>
      %c0_27 = arith.constant 0 : index
      %c32 = arith.constant 32 : index
      %36 = vector.load %arg4[%c0_27, %c32] : memref<32x96xf32, #tpu.memory_space<vmem>>, vector<32x64xf32>
      %cst_28 = arith.constant dense<0.000000e+00> : vector<16x64xf32>
      %37 = tpu.matmul %35, %36, %cst_28 {dimension_numbers = #tpu.dot_dimension_numbers<[1], [0], [0], [1], [0, 0, 1, 1], [], []>} : vector<16x32xf32>, vector<32x64xf32>, vector<16x64xf32> -> vector<16x64xf32>
      %38 = vector.extract_strided_slice %37 {offsets = [0, 0], sizes = [16, 32], strides = [1, 1]} : vector<16x64xf32> to vector<16x32xf32>
      %39 = vector.extract_strided_slice %37 {offsets = [0, 32], sizes = [16, 32], strides = [1, 1]} : vector<16x64xf32> to vector<16x32xf32>
      %40 = vector.shape_cast %38 : vector<16x32xf32> to vector<16x4x8xf32>
      %41 = tpu.transpose %40, [1, 0, 2] : vector<16x4x8xf32> -> vector<4x16x8xf32>
      %c0_29 = arith.constant 0 : index
      %c0_30 = arith.constant 0 : index
      %c0_31 = arith.constant 0 : index
      %42 = vector.load %arg8[%c0_29, %c0_30, %c0_31] : memref<4x16x8xf32, #tpu.memory_space<vmem>>, vector<4x16x8xf32>
      tpu.vector_store %arg8[%c0_29, %c0_30, %c0_31], %41 {strides = array<i32>} : memref<4x16x8xf32, #tpu.memory_space<vmem>>, vector<4x16x8xf32>,
      %43 = vector.shape_cast %39 : vector<16x32xf32> to vector<16x4x8xf32>
      %44 = tpu.transpose %43, [1, 0, 2] : vector<16x4x8xf32> -> vector<4x16x8xf32>
      %c0_32 = arith.constant 0 : index
      %c0_33 = arith.constant 0 : index
      %c0_34 = arith.constant 0 : index
      %45 = vector.load %arg9[%c0_32, %c0_33, %c0_34] : memref<4x16x8xf32, #tpu.memory_space<vmem>>, vector<4x16x8xf32>
      tpu.vector_store %arg9[%c0_32, %c0_33, %c0_34], %44 {strides = array<i32>} : memref<4x16x8xf32, #tpu.memory_space<vmem>>, vector<4x16x8xf32>,
    } else {
    }
    %c0 = arith.constant 0 : index
    %c0_1 = arith.constant 0 : index
    %c0_2 = arith.constant 0 : index
    %3 = vector.load %arg2[%c0, %c0_1, %c0_2] : memref<1x8x32xf32, #tpu.memory_space<vmem>>, vector<1x8x32xf32>
    %4 = vector.shape_cast %3 : vector<1x8x32xf32> to vector<8x32xf32>
    %c0_3 = arith.constant 0 : index
    %c0_4 = arith.constant 0 : index
    %5 = vector.load %arg4[%c0_3, %c0_4] : memref<32x96xf32, #tpu.memory_space<vmem>>, vector<32x32xf32>
    %cst = arith.constant dense<0.000000e+00> : vector<8x32xf32>
    %6 = tpu.matmul %4, %5, %cst {dimension_numbers = #tpu.dot_dimension_numbers<[1], [0], [0], [1], [0, 0, 1, 1], [], []>} : vector<8x32xf32>, vector<32x32xf32>, vector<8x32xf32> -> vector<8x32xf32>
    %cst_5 = arith.constant 0.353553385 : f32
    %7 = vector.broadcast %cst_5 : f32 to vector<8x32xf32>
    %8 = arith.mulf %6, %7 : vector<8x32xf32>
    %9 = vector.shape_cast %8 : vector<8x32xf32> to vector<8x4x8xf32>
    %10 = tpu.transpose %9, [1, 0, 2] : vector<8x4x8xf32> -> vector<4x8x8xf32>
    %c0_6 = arith.constant 0 : index
    %c0_7 = arith.constant 0 : index
    %c0_8 = arith.constant 0 : index
    %11 = vector.load %arg8[%c0_6, %c0_7, %c0_8] : memref<4x16x8xf32, #tpu.memory_space<vmem>>, vector<4x16x8xf32>
    %c0_9 = arith.constant 0 : index
    %c0_10 = arith.constant 0 : index
    %c0_11 = arith.constant 0 : index
    %12 = vector.load %arg9[%c0_9, %c0_10, %c0_11] : memref<4x16x8xf32, #tpu.memory_space<vmem>>, vector<4x16x8xf32>
    "tpu.trace_start"() <{level = 10 : i32, message = "hqd,hkd->hqk"}> : () -> ()
    %cst_12 = arith.constant dense<0.000000e+00> : vector<4x8x16xf32>
    %13 = tpu.matmul %10, %11, %cst_12 {dimension_numbers = #tpu.dot_dimension_numbers<[2], [2], [1], [1], [0, 0, 0, 1, 1, 1], [0], [0]>} : vector<4x8x8xf32>, vector<4x16x8xf32>, vector<4x8x16xf32> -> vector<4x8x16xf32>
    "tpu.trace_stop"() : () -> ()
    %cst_13 = arith.constant dense<0xFF800000> : vector<4x8xf32>
    %14 = vector.multi_reduction <maximumf>, %13, %cst_13 [2] : vector<4x8x16xf32> to vector<4x8xf32>
    %15 = vector.shape_cast %14 : vector<4x8xf32> to vector<4x8x1xf32>
    %16 = vector.broadcast %15 : vector<4x8x1xf32> to vector<4x8x16xf32>
    %17 = arith.subf %13, %16 : vector<4x8x16xf32>
    %18 = math.exp %17 : vector<4x8x16xf32>
    %cst_14 = arith.constant dense<0.000000e+00> : vector<4x8xf32>
    %19 = vector.multi_reduction <add>, %18, %cst_14 [2] : vector<4x8x16xf32> to vector<4x8xf32>
    %20 = vector.shape_cast %19 : vector<4x8xf32> to vector<4x8x1xf32>
    %21 = vector.broadcast %20 : vector<4x8x1xf32> to vector<4x8x16xf32>
    %22 = arith.divf %18, %21 : vector<4x8x16xf32>
    "tpu.trace_start"() <{level = 10 : i32, message = "hqk,hkd->hqd"}> : () -> ()
    %cst_15 = arith.constant dense<0.000000e+00> : vector<4x8x8xf32>
    %23 = tpu.matmul %22, %12, %cst_15 {dimension_numbers = #tpu.dot_dimension_numbers<[2], [1], [1], [2], [0, 0, 0, 1, 1, 2], [0], [0]>} : vector<4x8x16xf32>, vector<4x16x8xf32>, vector<4x8x8xf32> -> vector<4x8x8xf32>
    "tpu.trace_stop"() : () -> ()
    %24 = tpu.transpose %23, [1, 0, 2] : vector<4x8x8xf32> -> vector<8x4x8xf32>
    %25 = vector.shape_cast %24 : vector<8x4x8xf32> to vector<8x32xf32>
    %c0_16 = arith.constant 0 : index
    %c0_17 = arith.constant 0 : index
    %26 = vector.load %arg5[%c0_16, %c0_17] : memref<32x32xf32, #tpu.memory_space<vmem>>, vector<32x32xf32>
    %cst_18 = arith.constant dense<0.000000e+00> : vector<8x32xf32>
    %27 = tpu.matmul %25, %26, %cst_18 {dimension_numbers = #tpu.dot_dimension_numbers<[1], [0], [0], [1], [0, 0, 1, 1], [], []>} : vector<8x32xf32>, vector<32x32xf32>, vector<8x32xf32> -> vector<8x32xf32>
    %c0_19 = arith.constant 0 : index
    %c0_20 = arith.constant 0 : index
    %28 = vector.load %arg6[%c0_19, %c0_20] : memref<1x32xf32, #tpu.memory_space<vmem>>, vector<1x32xf32>
    %29 = vector.broadcast %28 : vector<1x32xf32> to vector<8x32xf32>
    %30 = arith.addf %27, %29 : vector<8x32xf32>
    %c0_21 = arith.constant 0 : index
    %c0_22 = arith.constant 0 : index
    %c0_23 = arith.constant 0 : index
    %31 = vector.load %arg7[%c0_21, %c0_22, %c0_23] : memref<1x8x32xf32, #tpu.memory_space<vmem>>, vector<1x8x32xf32>
    %32 = vector.shape_cast %31 : vector<1x8x32xf32> to vector<8x32xf32>
    %33 = vector.shape_cast %30 : vector<8x32xf32> to vector<1x8x32xf32>
    tpu.vector_store %arg7[%c0_21, %c0_22, %c0_23], %33 {strides = array<i32>} : memref<1x8x32xf32, #tpu.memory_space<vmem>>, vector<1x8x32xf32>,
    return
  }
  func.func @transform_0(%arg0: i32, %arg1: i32) -> (i32, i32, i32) {
    %c0_i32 = arith.constant 0 : i32
    %c0_i32_0 = arith.constant 0 : i32
    return %arg0, %arg1, %c0_i32 : i32, i32, i32
  }
  func.func @transform_1(%arg0: i32, %arg1: i32) -> (i32, i32, i32) {
    %c0_i32 = arith.constant 0 : i32
    %c0_i32_0 = arith.constant 0 : i32
    %c0_i32_1 = arith.constant 0 : i32
    return %arg0, %c0_i32, %c0_i32_0 : i32, i32, i32
  }
  func.func @transform_2(%arg0: i32, %arg1: i32) -> (i32, i32) {
    %c0_i32 = arith.constant 0 : i32
    %c0_i32_0 = arith.constant 0 : i32
    %c0_i32_1 = arith.constant 0 : i32
    return %c0_i32, %c0_i32_0 : i32, i32
  }
  func.func @transform_3(%arg0: i32, %arg1: i32) -> (i32, i32) {
    %c0_i32 = arith.constant 0 : i32
    %c0_i32_0 = arith.constant 0 : i32
    %c0_i32_1 = arith.constant 0 : i32
    return %c0_i32, %c0_i32_0 : i32, i32
  }
  func.func @transform_4(%arg0: i32, %arg1: i32) -> (i32, i32) {
    %c0_i32 = arith.constant 0 : i32
    %c0_i32_0 = arith.constant 0 : i32
    %c0_i32_1 = arith.constant 0 : i32
    return %c0_i32, %c0_i32_0 : i32, i32
  }
  func.func @transform_5(%arg0: i32, %arg1: i32) -> (i32, i32, i32) {
    %c0_i32 = arith.constant 0 : i32
    %c0_i32_0 = arith.constant 0 : i32
    return %arg0, %arg1, %c0_i32 : i32, i32, i32
  }
}

module attributes {stable_mosaic.version = 11 : i64} {
  func.func @cross_attn_kernel(%arg0: i32, %arg1: i32, %arg2: memref<1x8x32xf32, #tpu.memory_space<vmem>>, %arg3: memref<1x16x32xf32, #tpu.memory_space<vmem>>, %arg4: memref<32x96xf32, #tpu.memory_space<vmem>>, %arg5: memref<32x32xf32, #tpu.memory_space<vmem>>, %arg6: memref<1x32xf32, #tpu.memory_space<vmem>>, %arg7: memref<1x8x32xf32, #tpu.memory_space<vmem>>, %arg8: memref<4x16x8xf32, #tpu.memory_space<vmem>>, %arg9: memref<4x16x8xf32, #tpu.memory_space<vmem>>) attributes {dimension_semantics = [#tpu.dimension_semantics<parallel>, #tpu.dimension_semantics<arbitrary>], iteration_bounds = array<i64: 2, 1>, scalar_prefetch = 0 : i64, scratch_operands = 2 : i64, tpu.core_type = #tpu.core_type<tc>, window_params = [{transform_indices = @transform_0, window_bounds = array<i64: 1, 8, 32>}, {transform_indices = @transform_1, window_bounds = array<i64: 1, 16, 32>}, {pipeline_mode = #tpu.pipeline_mode<synchronous>, transform_indices = @transform_2, window_bounds = array<i64: 32, 96>}, {pipeline_mode = #tpu.pipeline_mode<synchronous>, transform_indices = @transform_3, window_bounds = array<i64: 32, 32>}, {pipeline_mode = #tpu.pipeline_mode<synchronous>, transform_indices = @transform_4, window_bounds = array<i64: 1, 32>}, {transform_indices = @transform_5, window_bounds = array<i64: 1, 8, 32>}]} {
    %c0_i32 = arith.constant 0 : i32
    %0 = arith.cmpi eq, %arg1, %c0_i32 : i32
    %1 = arith.extui %0 : i1 to i32
    %c0_i32_0 = arith.constant 0 : i32
    %2 = arith.cmpi ne, %1, %c0_i32_0 : i32
    scf.if %2 {
      %c0_24 = arith.constant 0 : index
      %c0_25 = arith.constant 0 : index
      %c0_26 = arith.constant 0 : index
      %34 = vector.load %arg3[%c0_24, %c0_25, %c0_26] : memref<1x16x32xf32, #tpu.memory_space<vmem>>, vector<1x16x32xf32>
      %35 = vector.shape_cast %34 : vector<1x16x32xf32> to vector<16x32xf32>
      %c0_27 = arith.constant 0 : index
      %c32 = arith.constant 32 : index
      %36 = vector.load %arg4[%c0_27, %c32] : memref<32x96xf32, #tpu.memory_space<vmem>>, vector<32x64xf32>
      %cst_28 = arith.constant dense<0.000000e+00> : vector<16x64xf32>
      %37 = tpu.matmul %35, %36, %cst_28 {dimension_numbers = #tpu.dot_dimension_numbers<[1], [0], [0], [1], [0, 0, 1, 1], [], []>} : vector<16x32xf32>, vector<32x64xf32>, vector<16x64xf32> -> vector<16x64xf32>
      %38 = vector.extract_strided_slice %37 {offsets = [0, 0], sizes = [16, 32], strides = [1, 1]} : vector<16x64xf32> to vector<16x32xf32>
      %39 = vector.extract_strided_slice %37 {offsets = [0, 32], sizes = [16, 32], strides = [1, 1]} : vector<16x64xf32> to vector<16x32xf32>
      %40 = vector.shape_cast %38 : vector<16x32xf32> to vector<16x4x8xf32>
      %41 = tpu.transpose %40, [1, 0, 2] : vector<16x4x8xf32> -> vector<4x16x8xf32>
      %c0_29 = arith.constant 0 : index
      %c0_30 = arith.constant 0 : index
      %c0_31 = arith.constant 0 : index
      %42 = vector.load %arg8[%c0_29, %c0_30, %c0_31] : memref<4x16x8xf32, #tpu.memory_space<vmem>>, vector<4x16x8xf32>
      tpu.vector_store %arg8[%c0_29, %c0_30, %c0_31], %41 {strides = array<i32>} : memref<4x16x8xf32, #tpu.memory_space<vmem>>, vector<4x16x8xf32>,
      %43 = vector.shape_cast %39 : vector<16x32xf32> to vector<16x4x8xf32>
      %44 = tpu.transpose %43, [1, 0, 2] : vector<16x4x8xf32> -> vector<4x16x8xf32>
      %c0_32 = arith.constant 0 : index
      %c0_33 = arith.constant 0 : index
      %c0_34 = arith.constant 0 : index
      %45 = vector.load %arg9[%c0_32, %c0_33, %c0_34] : memref<4x16x8xf32, #tpu.memory_space<vmem>>, vector<4x16x8xf32>
      tpu.vector_store %arg9[%c0_32, %c0_33, %c0_34], %44 {strides = array<i32>} : memref<4x16x8xf32, #tpu.memory_space<vmem>>, vector<4x16x8xf32>,
    } else {
    }
    %c0 = arith.constant 0 : index
    %c0_1 = arith.constant 0 : index
    %c0_2 = arith.constant 0 : index
    %3 = vector.load %arg2[%c0, %c0_1, %c0_2] : memref<1x8x32xf32, #tpu.memory_space<vmem>>, vector<1x8x32xf32>
    %4 = vector.shape_cast %3 : vector<1x8x32xf32> to vector<8x32xf32>
    %c0_3 = arith.constant 0 : index
    %c0_4 = arith.constant 0 : index
    %5 = vector.load %arg4[%c0_3, %c0_4] : memref<32x96xf32, #tpu.memory_space<vmem>>, vector<32x32xf32>
    %cst = arith.constant dense<0.000000e+00> : vector<8x32xf32>
    %6 = tpu.matmul %4, %5, %cst {dimension_numbers = #tpu.dot_dimension_numbers<[1], [0], [0], [1], [0, 0, 1, 1], [], []>} : vector<8x32xf32>, vector<32x32xf32>, vector<8x32xf32> -> vector<8x32xf32>
    %cst_5 = arith.constant 0.353553385 : f32
    %7 = vector.broadcast %cst_5 : f32 to vector<8x32xf32>
    %8 = arith.mulf %6, %7 : vector<8x32xf32>
    %9 = vector.shape_cast %8 : vector<8x32xf32> to vector<8x4x8xf32>
    %10 = tpu.transpose %9, [1, 0, 2] : vector<8x4x8xf32> -> vector<4x8x8xf32>
    %c0_6 = arith.constant 0 : index
    %c0_7 = arith.constant 0 : index
    %c0_8 = arith.constant 0 : index
    %11 = vector.load %arg8[%c0_6, %c0_7, %c0_8] : memref<4x16x8xf32, #tpu.memory_space<vmem>>, vector<4x16x8xf32>
    %c0_9 = arith.constant 0 : index
    %c0_10 = arith.constant 0 : index
    %c0_11 = arith.constant 0 : index
    %12 = vector.load %arg9[%c0_9, %c0_10, %c0_11] : memref<4x16x8xf32, #tpu.memory_space<vmem>>, vector<4x16x8xf32>
    "tpu.trace_start"() <{level = 10 : i32, message = "hqd,hkd->hqk"}> : () -> ()
    %cst_12 = arith.constant dense<0.000000e+00> : vector<4x8x16xf32>
    %13 = tpu.matmul %10, %11, %cst_12 {dimension_numbers = #tpu.dot_dimension_numbers<[2], [2], [1], [1], [0, 0, 0, 1, 1, 1], [0], [0]>} : vector<4x8x8xf32>, vector<4x16x8xf32>, vector<4x8x16xf32> -> vector<4x8x16xf32>
    "tpu.trace_stop"() : () -> ()
    %cst_13 = arith.constant dense<0xFF800000> : vector<4x8xf32>
    %14 = vector.multi_reduction <maximumf>, %13, %cst_13 [2] : vector<4x8x16xf32> to vector<4x8xf32>
    %15 = vector.shape_cast %14 : vector<4x8xf32> to vector<4x8x1xf32>
    %16 = vector.broadcast %15 : vector<4x8x1xf32> to vector<4x8x16xf32>
    %17 = arith.subf %13, %16 : vector<4x8x16xf32>
    %18 = math.exp %17 : vector<4x8x16xf32>
    %cst_14 = arith.constant dense<0.000000e+00> : vector<4x8xf32>
    %19 = vector.multi_reduction <add>, %18, %cst_14 [2] : vector<4x8x16xf32> to vector<4x8xf32>
    %20 = vector.shape_cast %19 : vector<4x8xf32> to vector<4x8x1xf32>
    %21 = vector.broadcast %20 : vector<4x8x1xf32> to vector<4x8x16xf32>
    %22 = arith.divf %18, %21 : vector<4x8x16xf32>
    "tpu.trace_start"() <{level = 10 : i32, message = "hqk,hkd->hqd"}> : () -> ()
    %cst_15 = arith.constant dense<0.000000e+00> : vector<4x8x8xf32>
    %23 = tpu.matmul %22, %12, %cst_15 {dimension_numbers = #tpu.dot_dimension_numbers<[2], [1], [1], [2], [0, 0, 0, 1, 1, 2], [0], [0]>} : vector<4x8x16xf32>, vector<4x16x8xf32>, vector<4x8x8xf32> -> vector<4x8x8xf32>
    "tpu.trace_stop"() : () -> ()
    %24 = tpu.transpose %23, [1, 0, 2] : vector<4x8x8xf32> -> vector<8x4x8xf32>
    %25 = vector.shape_cast %24 : vector<8x4x8xf32> to vector<8x32xf32>
    %c0_16 = arith.constant 0 : index
    %c0_17 = arith.constant 0 : index
    %26 = vector.load %arg5[%c0_16, %c0_17] : memref<32x32xf32, #tpu.memory_space<vmem>>, vector<32x32xf32>
    %cst_18 = arith.constant dense<0.000000e+00> : vector<8x32xf32>
    %27 = tpu.matmul %25, %26, %cst_18 {dimension_numbers = #tpu.dot_dimension_numbers<[1], [0], [0], [1], [0, 0, 1, 1], [], []>} : vector<8x32xf32>, vector<32x32xf32>, vector<8x32xf32> -> vector<8x32xf32>
    %c0_19 = arith.constant 0 : index
    %c0_20 = arith.constant 0 : index
    %28 = vector.load %arg6[%c0_19, %c0_20] : memref<1x32xf32, #tpu.memory_space<vmem>>, vector<1x32xf32>
    %29 = vector.broadcast %28 : vector<1x32xf32> to vector<8x32xf32>
    %30 = arith.addf %27, %29 : vector<8x32xf32>
    %c0_21 = arith.constant 0 : index
    %c0_22 = arith.constant 0 : index
    %c0_23 = arith.constant 0 : index
    %31 = vector.load %arg7[%c0_21, %c0_22, %c0_23] : memref<1x8x32xf32, #tpu.memory_space<vmem>>, vector<1x8x32xf32>
    %32 = vector.shape_cast %31 : vector<1x8x32xf32> to vector<8x32xf32>
    %33 = vector.shape_cast %30 : vector<8x32xf32> to vector<1x8x32xf32>
    tpu.vector_store %arg7[%c0_21, %c0_22, %c0_23], %33 {strides = array<i32>} : memref<1x8x32xf32, #tpu.memory_space<vmem>>, vector<1x8x32xf32>,
    return
  }
  func.func @transform_0(%arg0: i32, %arg1: i32) -> (i32, i32, i32) {
    %c0_i32 = arith.constant 0 : i32
    %c0_i32_0 = arith.constant 0 : i32
    return %arg0, %arg1, %c0_i32 : i32, i32, i32
  }
  func.func @transform_1(%arg0: i32, %arg1: i32) -> (i32, i32, i32) {
    %c0_i32 = arith.constant 0 : i32
    %c0_i32_0 = arith.constant 0 : i32
    %c0_i32_1 = arith.constant 0 : i32
    return %arg0, %c0_i32, %c0_i32_0 : i32, i32, i32
  }
  func.func @transform_2(%arg0: i32, %arg1: i32) -> (i32, i32) {
    %c0_i32 = arith.constant 0 : i32
    %c0_i32_0 = arith.constant 0 : i32
    %c0_i32_1 = arith.constant 0 : i32
    return %c0_i32, %c0_i32_0 : i32, i32
  }
  func.func @transform_3(%arg0: i32, %arg1: i32) -> (i32, i32) {
    %c0_i32 = arith.constant 0 : i32
    %c0_i32_0 = arith.constant 0 : i32
    %c0_i32_1 = arith.constant 0 : i32
    return %c0_i32, %c0_i32_0 : i32, i32
  }
  func.func @transform_4(%arg0: i32, %arg1: i32) -> (i32, i32) {
    %c0_i32 = arith.constant 0 : i32
    %c0_i32_0 = arith.constant 0 : i32
    %c0_i32_1 = arith.constant 0 : i32
    return %c0_i32, %c0_i32_0 : i32, i32
  }
  func.func @transform_5(%arg0: i32, %arg1: i32) -> (i32, i32, i32) {
    %c0_i32 = arith.constant 0 : i32
    %c0_i32_0 = arith.constant 0 : i32
    return %arg0, %arg1, %c0_i32 : i32, i32, i32
  }
}

</mosaic_0001>

<bundles_post_ra>
// kernel: tpu_custom_call.1
= control target key start
LH: loop header
LB: loop body
LE: loop exit
PB: predicated region body
PF: predicated region fallthrough
CT: control target
= control target key end

     0   :  { %s2631_s0 = inlined_call_operand.hbm [shape: f32[2,8,32], index: 0, kind: input, shape index: {}]   ;;  %s2632_s1 = inlined_call_operand.hbm [shape: f32[2,16,32], index: 1, kind: input, shape index: {}]   ;;  %s2633_s2 = inlined_call_operand.hbm [shape: f32[32,96], index: 2, kind: input, shape index: {}]   ;;  %s2634_s3 = inlined_call_operand.hbm [shape: f32[32,32], index: 3, kind: input, shape index: {}]   ;;  %s2635_s4 = inlined_call_operand.vmem [shape: f32[1,32], index: 4, kind: input, shape index: {}]   ;;  %s2636_s5 = inlined_call_operand.hbm [shape: f32[2,8,32], index: 5, kind: output, shape index: {}]  }
   0x1   :  { %2642 = sst [smem:[#allocation22_spill]] %s2633_s2 }
   0x2   :  { %2643 = sst [smem:[#allocation23_spill]] %s2634_s3 }
   0x3   :  { %10 = vsyncpa [#allocation5], 0 }
   0x4   :  { %12 = vsyncpa [#allocation5 + $0x1], 0 }
   0x5   :  { %13 = vsyncpa [#allocation8], 0 }
   0x6   :  { %15 = vsyncpa [#allocation8 + $0x1], 0 }
   0x7   :  { %16 = vsyncpa [#allocation11], 0 }
   0x8   :  { %17 = vsyncpa [#allocation6], 0 }
   0x9   :  { %19 = vsyncpa [#allocation6 + $0x1], 0  ;;  %s2089_s18 = smov 0   ;;  %s2091_s19 = smov 0  }
   0xa   :  { %s2093_s20 = smov 0   ;;  %s2095_s21 = smov 0  }
   0xb   :  { %s2097_s22 = smov 0   ;;  %s2099_s23 = smov 0  }
   0xc LB: > { %2644 = sst [smem:[#allocation18_spill]] %s2032_s20  ;;  %s2120_s24 = sadd.s32 4294967295, %s2044_s23   ;;  %s2044_s23 = sphi %s2099_s23, %s25_s23   ;;  %s2040_s22 = sphi %s2097_s22, %s2664_s22   ;;  %s2036_s21 = sphi %s2095_s21, %s2663_s21   ;;  %s2032_s20 = sphi %s2093_s20, %s2659_s20   ;;  %s2028_s19 = sphi %s2091_s19, %s2662_s19   ;;  %s2024_s18 = sphi %s2089_s18, %s2661_s18  }
   0xd   : > { %p1664_p0 = scmp.ge.s32.totalorder %s2044_s23, 1  ;;  %p60_p1 = scmp.eq.s32.totalorder %s2120_s24, 0 }
   0xe   : > { %p187_p2 = scmp.lt.s32.totalorder %s2044_s23, 3  ;;  %s2645_s2 = sld [smem:[#allocation22_spill]] }
   0xf   : > { %s2046_s29 = smov [#allocation9]   ;;  %p1667_p6 = scmp.ge.s32.totalorder %s2044_s23, 2 }
  0x10   : > { %p2128_p3 = pnand %p1664_p0, %p187_p2  ;;  %s200_s30 = sshll.u32 %s2046_s29, 4  ;;  %s201_s30 = int_to_ptr.vmem [resolvable:$true] %s200_s30 }
  0x11   : > { %s2647_s3 = sld [smem:[#allocation23_spill]]  ;;  %s2637_s9 = smov 128  }
  0x12   : > { %p1718_p4 = pneg %p2128_p3  ;;  %s2638_s10 = smov 8  }
  0x13   : > { %s2049_s11 = smov [#allocation10]   ;;  %s1663_s13 = sadd.s32 4294967294, %s2044_s23  }
  0x14   : > { %s198_s27 = sshll.u32 %s2645_s2, 4  ;;  %p1719_p5 = pnand %p1718_p4, %p60_p1  ;;  %s199_s27 = int_to_ptr.hbm [resolvable:$true] %s198_s27 }
  0x15   : > { %s214_s12 = sshll.u32 %s2049_s11, 4  ;;  %s37_s14 = sadd.s32 1, %s2040_s22  ;;  %s215_s12 = int_to_ptr.vmem [resolvable:$true] %s214_s12 }
  0x16   : > { %1721 = dma.hbm_to_vmem [thread:$0]  (!%p1719_p5), %s199_s27, 512, %s201_s30, [#allocation8], %s2637_s9, %s2637_s9, %s2638_s10  }
  0x17   : > { %s212_s8 = sshll.u32 %s2647_s3, 4  ;;  %p39_p7 = scmp.ge.s32.totalorder %s37_s14, 2  ;;  %s213_s8 = int_to_ptr.hbm [resolvable:$true] %s212_s8 }
  0x18   : > { %1724 = dma.hbm_to_vmem [thread:$0]  (!%p1719_p5), %s213_s8, 512, %s215_s12, [#allocation11], %s2637_s9, %s2637_s9, %s2638_s10  }
  0x19   : > { %s46_s15 = sadd.s32 1, %s2032_s20  ;;  %p53_p8 = scmp.ne.s32.totalorder %s2032_s20, %s2028_s19 }
  0x1a   : > { %p54_p9 = scmp.eq.s32.totalorder %s2044_s23, 0  ;;  %s2666_s14 = smov (%p39_p7, %s37_s14), 0 }
  0x1b   : > { %2648 = sst [smem:[#allocation19_spill]] %s2666_s14  ;;  %p59_p11 = scmp.ne.s32.totalorder %s2028_s19, %s2024_s18 }
  0x1c   : > { %p2154_p10 = por %p54_p9, %p53_p8  ;;  %s41_s17 = ssub.s32 %s2040_s22, %s2666_s14 }
  0x1d   : > { %p174_p12 = scmp.eq.s32.totalorder %s2120_s24, 1  ;;  %p44_p13 = scmp.eq.s32.totalorder %s41_s17, 0 }
  0x1e   : > { %p2165_p0 = por %p60_p1, %p59_p11  ;;  %p180_p4 = scmp.eq.s32.totalorder %s1663_s13, 1 }
  0x1f   : > { %p2169_p2 = por %p174_p12, %p53_p8  ;;  %p1738_p7 = scmp.lt.s32.totalorder %s2044_s23, 2 }
  0x20   : > { %s2174_s27 = scalar_select %p44_p13, %s2032_s20, %s46_s15  }
  0x21   : > { %p2176_p5 = por %p180_p4, %p59_p11  ;;  %s231_s30 = sand.u32 1, %s2032_s20  }
  0x22   : > { %2652 = sst [smem:[#allocation20_spill]] %s2174_s27  ;;  %s1669_s6 = sshll.u32 %s2040_s22, 3 }
  0x23   : > { %s2653_s29 = scalar_select %p2176_p5, 1, 0 }
  0x24   : > { %s1668_s7 = sshll.u32 %s231_s30, 3  ;;  %s240_s12 = scalar_lea.hbm %s2631_s0, %s1669_s6 }
  0x25   : > { %2654 = sst [smem:[#allocation21_spill]] %s2653_s29  ;;  %s242_s17 = sshll.u32 %s240_s12, 4  ;;  %s243_s17 = int_to_ptr.hbm [resolvable:$true] %s242_s17 }
  0x26   : > { %s235_s9 = scalar_lea.vmem [#allocation4], %s1668_s7  ;;  %p1726_p8 = pnand %p1738_p7, %p2154_p10 }
  0x27   : > { %s244_s10 = sshll.u32 %s235_s9, 4  ;;  %s1670_s13 = sshll.u32 %s231_s30, 4  ;;  %s245_s10 = int_to_ptr.vmem [resolvable:$true] %s244_s10 }
  0x28   : > { %s1703_s15 = sshll.u32 %s2040_s22, 4  ;;  %s255_s2 = scalar_lea.vmem [#allocation7], %s1670_s13 }
  0x29   : > { %s263_s3 = sshll.u32 %s255_s2, 4  ;;  %s232_s14 = scalar_lea.sflag [#allocation5], %s231_s30  ;;  %s264_s3 = int_to_ptr.vmem [resolvable:$true] %s263_s3 }
  0x2a   : > { %1728 = dma.hbm_to_vmem [thread:$0]  (!%p1726_p8), %s243_s17, 128, %s245_s10, %s232_s14  }
  0x2b   : > { %s251_s27 = sand.u32 1, %s2044_s23   ;;  %s260_s8 = scalar_lea.hbm %s2632_s1, %s1703_s15 }
  0x2c   : > { %s261_s6 = sshll.u32 %s260_s8, 4  ;;  %s252_s7 = scalar_lea.sflag [#allocation8], %s251_s27  ;;  %s262_s6 = int_to_ptr.hbm [resolvable:$true] %s261_s6 }
  0x2d   : > { %s2655_s9 = smov 8   ;;  %s2656_s11 = smov 128  }
  0x2e   : > { %1731 = dma.hbm_to_vmem [thread:$0]  (!%p1726_p8), %s262_s6, 256, %s264_s3, %s252_s7, %s2656_s11, %s2656_s11, %s2655_s9  }
  0x2f   : > { %275 = sbr.rel (%p2128_p3) target bundleno = 1317 (0x525), region = 40  ;;  %s2199_s2 = sand.u32 (!%p2128_p3), 1, %s2028_s19  }
  0x30   : > { %s1674_s10 = sshll.u32 (!%p2128_p3), %s2199_s2, 3  ;;  %s278_s20 = scalar_lea.sflag (!%p2128_p3), [#allocation5], %s2199_s2 }
  0x31   : > { %s281_s14 = scalar_lea.vmem (!%p2128_p3), [#allocation4], %s1674_s10 }
  0x34   : > { %2003 = dma.done.wait (%p2165_p0), %s278_s20, 128  }
  0x35   : > { %2005 = vsyncadd (%p2165_p0), %s278_s20, 4294967168  ;;  %s287_s3 = sand.u32 1, %s2120_s24   ;;  %s1675_s28 = sshll.u32 %s2199_s2, 4 }
  0x36   : > { %s288_s16 = scalar_lea.sflag [#allocation8], %s287_s3  ;;  %s2211_s27 = scalar_lea.vmem [#allocation7], %s1675_s28 }
  0x37   : > { %2007 = dma.done.wait (%p2165_p0), %s288_s16, 256  }
  0x38   : > { %2009 = vsyncadd (%p2165_p0), %s288_s16, 4294967040 }
  0x39   : > { %2011 = dma.done.wait (%p60_p1), [#allocation8], 512  }
  0x3a   : > { %2013 = vsyncadd (%p60_p1), [#allocation8], 4294966784 }
  0x3b   : > { %2015 = dma.done.wait (%p60_p1), [#allocation11], 512  }
  0x3c   : > { %2017 = vsyncadd (%p60_p1), [#allocation11], 4294966784  ;;  %v342_v0 = vld [vmem:[#allocation9 + $0x10] sm:$0xff]  ;;  %v343_v1 = vld [vmem:[#allocation9 + $0x18] sm:$0xff]  ;;  %s2050_s29 = smov 96   ;;  %vm360_vm0 = vcmask 261120  }
  0x3d   : > { %v1803_v2 = vpack.i.bf16 %v342_v0, %v343_v1  ;;  %913 = vmatpush.msra.mxu1 %v343_v1  ;;  %v340_v3 = vld [vmem:[#allocation9] sm:$0xff]  ;;  %v341_v4 = vld [vmem:[#allocation9 + $0x8] sm:$0xff]  ;;  %v892_v6 = vld [vmem:[%s281_s14] sm:$0xff]  ;;  %s2051_s24 = smov 112   ;;  %s2052_s25 = smov 104   ;;  %vm411_vm1 = vcmask 1047556  }
  0x3e   : > { %v1808_v5 = vpack.i.bf16 %v340_v3, %v341_v4  ;;  %v338_v13 = vld [vmem:[%s2211_s27] sm:$0xff]  ;;  %v339_v14 = vld [vmem:[%s2211_s27 + $0x8] sm:$0xff]  ;;  %s2053_s30 = smov 120   ;;  %v2054_v22 = vmov 1983009808   ;;  %vm631_vm2 = vcmask 64512  }
  0x3f   : > { %1804 = vrot.lane.b32.xlu0 %v1803_v2, %s2050_s29  ;;  %914 = vmatpush.msra.mxu1 %v342_v0  ;;  %v416_v23 = vunpack.c.l.s4 %v2054_v22  ;;  %v2055_v30 = vmov 1934713408   ;;  %vm1176_vm3 = vcmask 130048   ;;  %s2056_s12 = smov 16   ;;  %s2057_s17 = smov 24  }
  0x40   : > { %v440_v31 = vunpack.c.l.s4 %v2055_v30  ;;  %s2058_s13 = smov 8   ;;  %s1700_s15 = sshll.u32 %s2036_s21, 3 }
  0x41   : > { %915 = vmatpush.msra.mxu1 %v341_v4  ;;  %v2246_v28 = vunpack.c.0.s8 %v416_v23  ;;  %s1535_s7 = scalar_lea.hbm %s2636_s5, %s1700_s15  ;;  %s333_s20 = scalar_lea.vmem [#allocation12], %s1674_s10 }
  0x42   : > { %v2254_v41 = vunpack.c.0.s8 %v440_v31  ;;  %s1537_s14 = sshll.u32 %s333_s20, 4  ;;  %s1539_s3 = sshll.u32 %s1535_s7, 4  ;;  %s1538_s14 = int_to_ptr.vmem [resolvable:$true] %s1537_s14  ;;  %s1540_s3 = int_to_ptr.hbm [resolvable:$true] %s1539_s3 }
  0x43   : > { %916 = vmatpush.msra.mxu1 %v340_v3  ;;  %s1524_s21 = scalar_lea.sflag [#allocation6], %s2199_s2  ;;  %s1964_s28 = sshra.s32 %s1540_s3, 4  ;;  %s1965_s28 = int_to_ptr.hbm [resolvable:$true] %s1964_s28 }
  0x44   : > { %1681 = vmatmul.msk.f32.vlgmr.msra.gmra.mxu1 %vm360_vm0, %v892_v6  ;;  %s1966_s16 = scalar_lea.hbm %s1965_s28, 8  ;;  %s1970_s10 = scalar_lea.hbm %s2636_s5, 16 }
  0x45   : > { %p1967_p1 = scmp.ne.s32.totalorder %s1965_s28, %s1966_s16  ;;  %p1971_p10 = scmp.lt.s32.totalorder %s1965_s28, %s2636_s5 }
  0x46   : > { %p1972_p11 = scmp.lt.s32.totalorder %s1970_s10, %s1966_s16 }
  0x47   : > { %1809 = vrot.lane.b32.xlu0 %v1808_v5, %s2050_s29  ;;  %p1968_p3 = pnand %p1967_p1, %p2169_p2 }
  0x48   : > { %p1973_p12 = por %p1972_p11, %p1971_p10 }
  0x49   : > { %p1969_p9 = pneg %p1968_p3 }
  0x4b   : > { %p1974_p13 = pnand %p1973_p12, %p1969_p9 }
  0xb1   : > { %v1805_v7 = vpop.permute.xlu0 %1804 }
  0xb2   : > { %v1806_v8 = vunpack.i.l.bf16 %v1805_v7  ;;  %v1807_v9 = vunpack.i.h.bf16 %v1805_v7 }
  0xb4   : > { %379 = vmatpush.msra.mxu0 %v1806_v8 }
  0xb6   : > { %380 = vmatpush.msra.mxu0 %v1807_v9 }
  0xb9   : > { %v1810_v10 = vpop.permute.xlu0 %1809 }
  0xba   : > { %v1811_v11 = vunpack.i.l.bf16 %v1810_v10  ;;  %v1812_v12 = vunpack.i.h.bf16 %v1810_v10 }
  0xbc   : > { %381 = vmatpush.msra.mxu0 %v1811_v11 }
  0xbe   : > { %382 = vmatpush.msra.mxu0 %v1812_v12 }
  0xbf   : > { %1679 = vmatmul.msk.f32.vlgmr.msra.gmra.mxu0 %vm360_vm0, %v338_v13 }
  0xc1   : > { %v918_v16 = vpop.f32.mrf.mxu1 }
  0xc2   : > { %v921_v17 = vmul.f32 0.35355338, %v918_v16 }
  0xc4   : > { %v935_v40 = vrot.slane %v921_v17, 4 }
  0xc7   : > { %1680 = vmatmul.msk.f32.gmra.mxu0 %vm360_vm0, %v339_v14 }
 0x13c   : > { %v384_v15 = vpop.f32.mrf.mxu0 }
 0x13d   : > { %398 = vrot.lane.b32.xlu0 %v384_v15, %s2051_s24  ;;  %v413_v33 = vrot.slane %v384_v15, 4 }
 0x144   : > { %v387_v18 = vpop.f32.mrf.mxu0 }
 0x145   : > { %926 = vrot.lane.b32.xlu0 %v921_v17, %s2051_s24  ;;  %406 = vrot.lane.b32.xlu2 %v387_v18, %s2052_s25  ;;  %v469_v35 = vrot.slane %v387_v18, 4 }
 0x146   : > { %394 = vrot.lane.b32.xlu1 %v387_v18, %s2053_s30 }
 0x14d   : > { %640 = vrot.lane.b32.xlu0 %v384_v15, %s2050_s29  ;;  %392 = vrot.lane.b32.xlu2 %v384_v15, %s2053_s30 }
 0x14e   : > { %400 = vrot.lane.b32.xlu1 %v387_v18, %s2051_s24 }
 0x155   : > { %923 = vrot.lane.b32.xlu2 %v921_v17, %s2053_s30 }
 0x156   : > { %404 = vrot.lane.b32.xlu1 %v384_v15, %s2052_s25 }
 0x15d   : > { %642 = vrot.lane.b32.xlu2 %v387_v18, %s2050_s29 }
 0x15e   : > { %929 = vrot.lane.b32.xlu1 %v921_v17, %s2052_s25 }
 0x19f   : > { %v2234_v19 = vpop.permute.xlu2 %406 }
 0x1a0   : > { %v479_v26 = vrot.slane %v2234_v19, 4 }
 0x1a7   : > { %v2236_v20 = vpop.permute.xlu2 %392 }
 0x1a8   : > { %644 = vrot.lane.b32.xlu2 %v2236_v20, %s2050_s29  ;;  %v425_v2 = vrot.slane %v2236_v20, 4 }
 0x1af   : > { %v2240_v21 = vpop.permute.xlu0 %398  ;;  %v2274_v61 = vpop.permute.xlu2 %923 }
 0x1b0   : > { %v410_v32 = vrot.slane %v2240_v21, 4  ;;  %v414_v36 = vsel %vm411_vm1, %v2240_v21, %v413_v33  ;;  %v947_v4 = vrot.slane %v2274_v61, 4 }
 0x1b1   : > { %v2261_v47 = vperm.slane %v414_v36, %v2246_v28 }
 0x1b2   : > { %v412_v44 = vsel %vm411_vm1, %v410_v32, %v384_v15 }
 0x1b3   : > { %v418_v55 = vperm.slane %v412_v44, %v2246_v28  ;;  %v449_v3 = vrot.slane %v2261_v47, 4 }
 0x1b5   : > { %v437_v7 = vrot.slane %v418_v55, 4 }
 0x1b7   : > { %v927_v37 = vpop.permute.xlu0 %926 }
 0x1b8   : > { %v395_v24 = vpop.permute.xlu1 %394  ;;  %v932_v48 = vrot.slane %v927_v37, 4  ;;  %v936_v49 = vsel %vm411_vm1, %v927_v37, %v935_v40 }
 0x1b9   : > { %v481_v25 = vrot.slane %v395_v24, 4  ;;  %646 = vrot.lane.b32.xlu1 %v395_v24, %s2050_s29  ;;  %v480_v29 = vsel %vm411_vm1, %v479_v26, %v395_v24  ;;  %v2270_v57 = vperm.slane %v936_v49, %v2246_v28 }
 0x1ba   : > { %v486_v38 = vperm.slane %v480_v29, %v2246_v28  ;;  %v934_v62 = vsel %vm411_vm1, %v932_v48, %v921_v17 }
 0x1bb   : > { %v482_v27 = vsel %vm411_vm1, %v2234_v19, %v481_v25  ;;  %v2287_v11 = vperm.slane %v934_v62, %v2246_v28  ;;  %v971_v12 = vrot.slane %v2270_v57, 4 }
 0x1bc   : > { %v490_v34 = vperm.slane %v482_v27, %v2246_v28  ;;  %v491_v51 = vrot.slane %v486_v38, 4 }
 0x1be   : > { %v503_v45 = vrot.slane %v490_v34, 4 }
 0x1c0   : > { %v401_v39 = vpop.permute.xlu1 %400 }
 0x1c1   : > { %v467_v42 = vrot.slane %v401_v39, 4  ;;  %v470_v43 = vsel %vm411_vm1, %v401_v39, %v469_v35  ;;  %650 = vrot.lane.b32.xlu0 %v401_v39, %s2050_s29 }
 0x1c2   : > { %v478_v46 = vperm.slane %v470_v43, %v2246_v28 }
 0x1c3   : > { %v468_v50 = vsel %vm411_vm1, %v467_v42, %v387_v18 }
 0x1c4   : > { %v474_v52 = vperm.slane %v468_v50, %v2246_v28  ;;  %v504_v53 = vsel %vm411_vm1, %v503_v45, %v478_v46  ;;  %v505_v54 = vrot.slane %v478_v46, 4 }
 0x1c5   : > { %v510_v56 = vperm.slane %v504_v53, %v2254_v41 }
 0x1c6   : > { %v492_v58 = vsel %vm411_vm1, %v491_v51, %v474_v52  ;;  %v493_v59 = vrot.slane %v474_v52, 4  ;;  %v506_v60 = vsel %vm411_vm1, %v490_v34, %v505_v54 }
 0x1c7   : > { %v498_v63 = vperm.slane %v492_v58, %v2254_v41  ;;  %v514_v0 = vperm.slane %v506_v60, %v2254_v41  ;;  %v519_v1 = vrot.slane %v510_v56, 4 }
 0x1c8   : > { %v494_v5 = vsel %vm411_vm1, %v486_v38, %v493_v59  ;;  %v2283_v6 = vpop.permute.xlu1 %404 }
 0x1c9   : > { %v502_v8 = vperm.slane %v494_v5, %v2254_v41  ;;  %v515_v9 = vrot.slane %v498_v63, 4  ;;  %v521_v10 = vrot.slane %v514_v0, 4  ;;  %v423_v13 = vrot.slane %v2283_v6, 4 }
 0x1ca   : > { %v426_v14 = vsel %vm411_vm1, %v2283_v6, %v425_v2  ;;  %v520_v16 = vsel %vm411_vm1, 0.0, %v519_v1 }
 0x1cb   : > { %v517_v15 = vrot.slane %v502_v8, 4  ;;  %v522_v17 = vsel %vm411_vm1, 0.0, %v521_v10  ;;  %v588_v18 = vsel %vm411_vm1, %v521_v10, %v510_v56  ;;  %v424_v24 = vsel %vm411_vm1, %v423_v13, %v2236_v20 }
 0x1cc   : > { %v592_v22 = vperm.slane %v588_v18, %v2246_v28  ;;  %v593_v23 = vrot.slane %v522_v17, 4  ;;  %v434_v25 = vperm.slane %v426_v14, %v2246_v28  ;;  %v516_v26 = vsel %vm411_vm1, 0.0, %v515_v9 }
 0x1cd   : > { %v518_v27 = vsel %vm411_vm1, 0.0, %v517_v15  ;;  %v577_v29 = vsel %vm411_vm1, %v517_v15, %v498_v63  ;;  %v430_v30 = vperm.slane %v424_v24, %v2246_v28 }
 0x1ce   : > { %v581_v31 = vperm.slane %v577_v29, %v2246_v28  ;;  %v582_v32 = vrot.slane %v518_v27, 4  ;;  %v594_v33 = vsel %vm411_vm1, %v593_v23, %v520_v16  ;;  %v613_v34 = vrot.slane %v592_v22, 4 }
 0x1cf   : > { %v598_v35 = vperm.slane %v594_v33, %v2246_v28  ;;  %v435_v36 = vrot.slane %v430_v30, 4  ;;  %v438_v20 = vsel %vm411_vm1, %v430_v30, %v437_v7  ;;  %v447_v37 = vrot.slane %v434_v25, 4 }
 0x1d0   : > { %v583_v38 = vsel %vm411_vm1, %v582_v32, %v516_v26  ;;  %v601_v39 = vrot.slane %v581_v31, 4  ;;  %v446_v40 = vperm.slane %v438_v20, %v2254_v41  ;;  %v450_v42 = vsel %vm411_vm1, %v434_v25, %v449_v3  ;;  %v930_v13 = vpop.permute.xlu1 %929 }
 0x1d1   : > { %v587_v43 = vperm.slane %v583_v38, %v2246_v28  ;;  %v611_v44 = vrot.slane %v598_v35, 4  ;;  %v614_v45 = vsel %vm411_vm1, %v598_v35, %v613_v34  ;;  %v436_v46 = vsel %vm411_vm1, %v435_v36, %v418_v55 }
 0x1d2   : > { %v622_v48 = vperm.slane %v614_v45, %v2254_v41  ;;  %v442_v49 = vperm.slane %v436_v46, %v2254_v41  ;;  %v448_v50 = vsel %vm411_vm1, %v447_v37, %v2261_v47  ;;  %v458_v51 = vperm.slane %v450_v42, %v2254_v41 }
 0x1d3   : > { %v599_v52 = vrot.slane %v587_v43, 4  ;;  %v602_v53 = vsel %vm411_vm1, %v587_v43, %v601_v39  ;;  %v612_v54 = vsel %vm411_vm1, %v611_v44, %v592_v22  ;;  %v454_v56 = vperm.slane %v448_v50, %v2254_v41 }
 0x1d4   : > { %v610_v58 = vperm.slane %v602_v53, %v2254_v41  ;;  %v618_v55 = vperm.slane %v612_v54, %v2254_v41  ;;  %v627_v59 = vrot.slane %v622_v48, 4  ;;  %v459_v60 = vrot.slane %v442_v49, 4 }
 0x1d5   : > { %v600_v62 = vsel %vm411_vm1, %v599_v52, %v581_v31  ;;  %v461_v63 = vrot.slane %v446_v40, 4  ;;  %v463_v0 = vrot.slane %v454_v56, 4  ;;  %v465_v47 = vrot.slane %v458_v51, 4 }
 0x1d6   : > { %v606_v1 = vperm.slane %v600_v62, %v2254_v41  ;;  %v623_v2 = vrot.slane %v618_v55, 4  ;;  %v628_v3 = vsel %vm411_vm1, %v627_v59, %v610_v58  ;;  %v629_v5 = vrot.slane %v610_v58, 4 }
 0x1d7   : > { %637 = vst.msk [vmem:[#allocation2 + $0x28] sm:$0xff] %vm631_vm2, %v628_v3  ;;  %v460_v7 = vsel %vm411_vm1, 0.0, %v459_v60  ;;  %v462_v8 = vsel %vm411_vm1, 0.0, %v461_v63  ;;  %v464_v9 = vsel %vm411_vm1, 0.0, %v463_v0  ;;  %v466_v10 = vsel %vm411_vm1, 0.0, %v465_v47 }
 0x1d8   : > { %v624_v14 = vsel %vm411_vm1, %v623_v2, %v606_v1  ;;  %v625_v15 = vrot.slane %v606_v1, 4  ;;  %v630_v16 = vsel %vm411_vm1, %v622_v48, %v629_v5  ;;  %v523_v17 = vsel %vm411_vm1, %v461_v63, %v442_v49 }
 0x1d9   : > { %633 = vst.msk [vmem:[#allocation2 + $0x8] sm:$0xff] %vm631_vm2, %v624_v14  ;;  %v527_v18 = vperm.slane %v523_v17, %v2246_v28  ;;  %v528_v22 = vrot.slane %v462_v8, 4  ;;  %v534_v23 = vsel %vm411_vm1, %v465_v47, %v454_v56  ;;  %v539_v24 = vrot.slane %v466_v10, 4 }
 0x1da   : > { %v626_v25 = vsel %vm411_vm1, %v618_v55, %v625_v15  ;;  %639 = vst.msk [vmem:[#allocation2 + $0x38] sm:$0xff] %vm631_vm2, %v630_v16  ;;  %v538_v26 = vperm.slane %v534_v23, %v2246_v28  ;;  %v945_v27 = vrot.slane %v930_v13, 4  ;;  %v948_v29 = vsel %vm411_vm1, %v930_v13, %v947_v4 }
 0x1db   : > { %635 = vst.msk [vmem:[#allocation2 + $0x18] sm:$0xff] %vm631_vm2, %v626_v25  ;;  %v529_v30 = vsel %vm411_vm1, %v528_v22, %v460_v7  ;;  %v540_v31 = vsel %vm411_vm1, %v539_v24, %v464_v9  ;;  %v547_v32 = vrot.slane %v527_v18, 4  ;;  %v956_v33 = vperm.slane %v948_v29, %v2246_v28 }
 0x1dc   : > { %v533_v34 = vperm.slane %v529_v30, %v2246_v28  ;;  %v544_v35 = vperm.slane %v540_v31, %v2246_v28  ;;  %v559_v36 = vrot.slane %v538_v26, 4  ;;  %v946_v20 = vsel %vm411_vm1, %v945_v27, %v2274_v61 }
 0x1dd   : > { %v959_v37 = vrot.slane %v2287_v11, 4  ;;  %v952_v4 = vperm.slane %v946_v20, %v2246_v28  ;;  %v969_v38 = vrot.slane %v956_v33, 4  ;;  %v972_v39 = vsel %vm411_vm1, %v956_v33, %v971_v12 }
 0x1de   : > { %v545_v40 = vrot.slane %v533_v34, 4  ;;  %v548_v42 = vsel %vm411_vm1, %v533_v34, %v547_v32  ;;  %v557_v43 = vrot.slane %v544_v35, 4  ;;  %v560_v44 = vsel %vm411_vm1, %v544_v35, %v559_v36  ;;  %v1048_v45 = vld [vmem:[#allocation2 + $0x28] sm:$0xff] }
 0x1df   : > { %v556_v46 = vperm.slane %v548_v42, %v2254_v41  ;;  %v568_v61 = vperm.slane %v560_v44, %v2254_v41  ;;  %v957_v48 = vrot.slane %v952_v4, 4  ;;  %v960_v49 = vsel %vm411_vm1, %v952_v4, %v959_v37  ;;  %1688 = vmatpush.xpose.msk.msrb.mxu1 %vm631_vm2, %v1048_v45 }
 0x1e0   : > { %v546_v50 = vsel %vm411_vm1, %v545_v40, %v527_v18  ;;  %v558_v12 = vsel %vm411_vm1, %v557_v43, %v538_v26  ;;  %v968_v51 = vperm.slane %v960_v49, %v2254_v41  ;;  %v970_v52 = vsel %vm411_vm1, %v969_v38, %v2270_v57  ;;  %v1044_v53 = vld [vmem:[#allocation2 + $0x8] sm:$0xff] }
 0x1e1   : > { %v552_v54 = vperm.slane %v546_v50, %v2254_v41  ;;  %v564_v56 = vperm.slane %v558_v12, %v2254_v41  ;;  %v573_v58 = vrot.slane %v568_v61, 4  ;;  %v575_v55 = vrot.slane %v556_v46, 4  ;;  %1682 = vmatpush.xpose.msk.msra.mxu2 %vm631_vm2, %v1044_v53  ;;  %v1050_v38 = vld [vmem:[#allocation2 + $0x38] sm:$0xff] }
 0x1e2   : > { %v958_v59 = vsel %vm411_vm1, %v957_v48, %v2287_v11  ;;  %v976_v60 = vperm.slane %v970_v52, %v2254_v41  ;;  %v980_v62 = vperm.slane %v972_v39, %v2254_v41  ;;  %v983_v63 = vrot.slane %v968_v51, 4  ;;  %v1046_v0 = vld [vmem:[#allocation2 + $0x18] sm:$0xff] }
 0x1e3   : > { %v569_v47 = vrot.slane %v564_v56, 4  ;;  %v571_v57 = vrot.slane %v552_v54, 4  ;;  %v574_v1 = vsel %vm411_vm1, %v573_v58, %v556_v46  ;;  %v576_v2 = vsel %vm411_vm1, %v568_v61, %v575_v55  ;;  %1685 = vmatpush.xpose.msk.msra.mxu3 %vm631_vm2, %v1046_v0 }
 0x1e4   : > { %636 = vst.msk [vmem:[#allocation2 + $0x20] sm:$0xff] %vm631_vm2, %v574_v1  ;;  %v964_v3 = vperm.slane %v958_v59, %v2254_v41  ;;  %v984_v11 = vsel %vm411_vm1, 0.0, %v983_v63  ;;  %v985_v5 = vrot.slane %v976_v60, 4  ;;  %v987_v7 = vrot.slane %v980_v62, 4 }
 0x1e5   : > { %v570_v8 = vsel %vm411_vm1, %v569_v47, %v552_v54  ;;  %v572_v9 = vsel %vm411_vm1, %v564_v56, %v571_v57  ;;  %638 = vst.msk [vmem:[#allocation2 + $0x30] sm:$0xff] %vm631_vm2, %v576_v2  ;;  %v994_v10 = vrot.slane %v984_v11, 4  ;;  %v641_v47 = vpop.permute.xlu0 %640 }
 0x1e6   : > { %632 = vst.msk [vmem:[#allocation2] sm:$0xff] %vm631_vm2, %v570_v8  ;;  %v981_v13 = vrot.slane %v964_v3, 4  ;;  %v986_v14 = vsel %vm411_vm1, 0.0, %v985_v5  ;;  %v988_v15 = vsel %vm411_vm1, 0.0, %v987_v7  ;;  %v1000_v16 = vsel %vm411_vm1, %v987_v7, %v976_v60 }
 0x1e7   : > { %634 = vst.msk [vmem:[#allocation2 + $0x10] sm:$0xff] %vm631_vm2, %v572_v9  ;;  %v1004_v17 = vperm.slane %v1000_v16, %v2246_v28  ;;  %v1005_v18 = vrot.slane %v988_v15, 4  ;;  %v989_v22 = vsel %vm411_vm1, %v983_v63, %v964_v3  ;;  %v643_v63 = vpop.permute.xlu2 %642 }
 0x1e8   : > { %v982_v23 = vsel %vm411_vm1, 0.0, %v981_v13  ;;  %v993_v24 = vperm.slane %v989_v22, %v2246_v28 }
 0x1e9   : > { %v1006_v25 = vsel %vm411_vm1, %v1005_v18, %v986_v14  ;;  %v995_v26 = vsel %vm411_vm1, %v994_v10, %v982_v23  ;;  %v1025_v27 = vrot.slane %v1004_v17, 4  ;;  %v666_v18 = vrot.slane %v641_v47, 4 }
 0x1ea   : > { %v999_v29 = vperm.slane %v995_v26, %v2246_v28  ;;  %v1010_v30 = vperm.slane %v1006_v25, %v2246_v28  ;;  %v1013_v31 = vrot.slane %v993_v24, 4 }
 0x1eb   : > { %v1047_v32 = vld [vmem:[#allocation2 + $0x20] sm:$0xff] }
 0x1ec   : > { %1689 = vmatpush.xpose.msk.msrb.mxu1 %vm631_vm2, %v1047_v32  ;;  %v1014_v33 = vsel %vm411_vm1, %v999_v29, %v1013_v31  ;;  %v1026_v34 = vsel %vm411_vm1, %v1010_v30, %v1025_v27  ;;  %v1011_v35 = vrot.slane %v999_v29, 4  ;;  %v1023_v36 = vrot.slane %v1010_v30, 4  ;;  %v1049_v49 = vld [vmem:[#allocation2 + $0x30] sm:$0xff] }
 0x1ed   : > { %v1043_v20 = vld [vmem:[#allocation2] sm:$0xff]  ;;  %v1022_v37 = vperm.slane %v1014_v33, %v2254_v41  ;;  %v1034_v4 = vperm.slane %v1026_v34, %v2254_v41 }
 0x1ee   : > { %1683 = vmatpush.xpose.msk.msra.mxu2 %vm631_vm2, %v1043_v20  ;;  %v1045_v39 = vld [vmem:[#allocation2 + $0x10] sm:$0xff]  ;;  %v1012_v40 = vsel %vm411_vm1, %v1011_v35, %v993_v24  ;;  %v1024_v42 = vsel %vm411_vm1, %v1023_v36, %v1004_v17 }
 0x1ef   : > { %v1039_v43 = vrot.slane %v1034_v4, 4  ;;  %1686 = vmatpush.xpose.msk.msra.mxu3 %vm631_vm2, %v1045_v39  ;;  %v1018_v44 = vperm.slane %v1012_v40, %v2254_v41  ;;  %v1030_v45 = vperm.slane %v1024_v42, %v2254_v41  ;;  %v1041_v51 = vrot.slane %v1022_v37, 4 }
 0x1f0   : > { %v722_v39 = vrot.slane %v643_v63, 4 }
 0x1f1   : > { %v1040_v46 = vsel %vm411_vm1, %v1039_v43, %v1022_v37  ;;  %v1035_v61 = vrot.slane %v1030_v45, 4  ;;  %v1037_v48 = vrot.slane %v1018_v44, 4  ;;  %v1042_v52 = vsel %vm411_vm1, %v1034_v4, %v1041_v51 }
 0x1f2   : > { %1691 = vmatpush.xpose.msk.msrb.mxu2 %vm631_vm2, %v1050_v38  ;;  %1690 = vmatmul.msk.f32.vlgmr.msrb.gmra.mxu1 %vm631_vm2, %v1040_v46 }
 0x1f3   : > { %v1036_v50 = vsel %vm411_vm1, %v1035_v61, %v1018_v44  ;;  %v1038_v12 = vsel %vm411_vm1, %v1030_v45, %v1037_v48 }
 0x1f4   : > { %1684 = vmatmul.msk.f32.vlgmr.msra.gmra.mxu2 %vm631_vm2, %v1036_v50  ;;  %1687 = vmatmul.msk.f32.vlgmr.msra.gmra.mxu3 %vm631_vm2, %v1038_v12 }
 0x1f6   : > { %1692 = vmatpush.xpose.msk.msrb.mxu2 %vm631_vm2, %v1049_v49 }
 0x1fc   : > { %1693 = vmatmul.msk.f32.vlgmr.msrb.gmra.mxu2 %vm631_vm2, %v1042_v52 }
 0x202   : > { %v645_v57 = vpop.permute.xlu2 %644 }
 0x203   : > { %v678_v22 = vrot.slane %v645_v57, 4 }
 0x22b   : > { %v2428_v0 = vpop.permute.xlu1 %646 }
 0x233   : > { %v651_v11 = vpop.permute.xlu0 %650 }
 0x234   : > { %v720_v33 = vrot.slane %v651_v11, 4  ;;  %v723_v48 = vsel %vm411_vm1, %v651_v11, %v722_v39 }
 0x236   : > { %v721_v61 = vsel %vm411_vm1, %v720_v33, %v643_v63 }
 0x26f   : > { %v1144_v53 = vpop.f32.mrf.mxu1 }
 0x270   : > { %v1183_v54 = vsel %vm1176_vm3, %v1144_v53, -inf }
 0x271   : > { %1184 = vmax.xlane.f32.xlu1 %v1183_v54 }
 0x277   : > { %v1086_v56 = vpop.f32.mrf.mxu2  ;;  %v1115_v55 = vpop.f32.mrf.mxu3 }
 0x278   : > { %v1177_v58 = vsel %vm1176_vm3, %v1086_v56, -inf  ;;  %v1180_v60 = vsel %vm1176_vm3, %v1115_v55, -inf }
 0x279   : > { %1178 = vmax.xlane.f32.xlu2 %v1177_v58  ;;  %v734_v58 = vrot.slane %v2428_v0, 4 }
 0x27f   : > { %v1173_v59 = vpop.f32.mrf.mxu2 }
 0x280   : > { %v1186_v62 = vsel %vm1176_vm3, %v1173_v59, -inf }
 0x281   : > { %1181 = vmax.xlane.f32.xlu2 %v1180_v60  ;;  %1187 = vmax.xlane.f32.xlu0 %v1186_v62 }
 0x28a   : > { %648 = vrot.lane.b32.xlu1 %v2240_v21, %s2050_s29 }
 0x295   : > { %654 = vrot.lane.b32.xlu0 %v2234_v19, %s2050_s29 }
 0x299   : > { %652 = vrot.lane.b32.xlu2 %v2283_v6, %s2050_s29 }
 0x2e4   : > { %v1185_v1 = vpop.xlane.xlu1 %1184 }
 0x2e5   : > { %v1191_v2 = vsub.f32 %v1144_v53, %v1185_v1 }
 0x2e7   : > { %v1197_v3 = vmul.f32 1.442695, %v1191_v2 }
 0x2e9   : > { %1814 = vpow2.f32 %v1197_v3 }
 0x2ec   : > { %v1179_v5 = vpop.xlane.xlu2 %1178 }
 0x2ed   : > { %v1189_v7 = vsub.f32 %v1086_v56, %v1179_v5 }
 0x2ef   : > { %v2430_v8 = vpop.eup %1814  ;;  %v1193_v21 = vmul.f32 1.442695, %v1189_v7 }
 0x2f0   : > { %v1207_v19 = vsel %vm1176_vm3, %v2430_v8, 0.0 }
 0x2f1   : > { %1816 = vpow2.f32 %v1193_v21  ;;  %1208 = vadd.xlane.f32.xlu2 %v1207_v19 }
 0x2f4   : > { %v1182_v6 = vpop.xlane.xlu2 %1181  ;;  %v1188_v9 = vpop.xlane.xlu0 %1187 }
 0x2f5   : > { %v1190_v10 = vsub.f32 %v1115_v55, %v1182_v6  ;;  %v1192_v13 = vsub.f32 %v1173_v59, %v1188_v9  ;;  %v727_v55 = vperm.slane %v721_v61, %v2246_v28  ;;  %v731_v59 = vperm.slane %v723_v48, %v2246_v28 }
 0x2f7   : > { %v2434_v14 = vpop.eup %1816  ;;  %v1195_v15 = vmul.f32 1.442695, %v1190_v10  ;;  %v1199_v16 = vmul.f32 1.442695, %v1192_v13 }
 0x2f8   : > { %v1201_v17 = vsel %vm1176_vm3, %v2434_v14, 0.0 }
 0x2f9   : > { %1818 = vpow2.f32 %v1195_v15  ;;  %1202 = vadd.xlane.f32.xlu1 %v1201_v17 }
 0x2fa   : > { %1820 = vpow2.f32 %v1199_v16 }
 0x2fc   : > { %v649_v23 = vpop.permute.xlu1 %648  ;;  %v653_v24 = vpop.permute.xlu2 %652 }
 0x2fd   : > { %v664_v25 = vrot.slane %v649_v23, 4  ;;  %v667_v26 = vsel %vm411_vm1, %v649_v23, %v666_v18  ;;  %v676_v27 = vrot.slane %v653_v24, 4  ;;  %v679_v29 = vsel %vm411_vm1, %v653_v24, %v678_v22 }
 0x2fe   : > { %v675_v30 = vperm.slane %v667_v26, %v2246_v28  ;;  %v687_v31 = vperm.slane %v679_v29, %v2246_v28  ;;  %v746_v22 = vrot.slane %v727_v55, 4  ;;  %v758_v23 = vrot.slane %v731_v59, 4 }
 0x2ff   : > { %v2442_v32 = vpop.eup %1818  ;;  %v665_v34 = vsel %vm411_vm1, %v664_v25, %v641_v47  ;;  %v677_v35 = vsel %vm411_vm1, %v676_v27, %v645_v57 }
 0x300   : > { %v2446_v36 = vpop.eup %1820  ;;  %v671_v20 = vperm.slane %v665_v34, %v2246_v28  ;;  %v702_v37 = vrot.slane %v675_v30, 4  ;;  %v683_v4 = vperm.slane %v677_v35, %v2246_v28  ;;  %v700_v38 = vrot.slane %v687_v31, 4 }
 0x301   : > { %v1204_v40 = vsel %vm1176_vm3, %v2442_v32, 0.0  ;;  %v1210_v42 = vsel %vm1176_vm3, %v2446_v36, 0.0 }
 0x302   : > { %v690_v43 = vrot.slane %v671_v20, 4  ;;  %v688_v44 = vrot.slane %v683_v4, 4  ;;  %v701_v45 = vsel %vm411_vm1, %v700_v38, %v675_v30  ;;  %v703_v46 = vsel %vm411_vm1, %v687_v31, %v702_v37  ;;  %1205 = vadd.xlane.f32.xlu1 %v1204_v40  ;;  %1211 = vadd.xlane.f32.xlu0 %v1210_v42 }
 0x303   : > { %v707_v49 = vperm.slane %v701_v45, %v2254_v41  ;;  %v711_v50 = vperm.slane %v703_v46, %v2254_v41 }
 0x304   : > { %v689_v12 = vsel %vm411_vm1, %v688_v44, %v671_v20  ;;  %v691_v51 = vsel %vm411_vm1, %v683_v4, %v690_v43 }
 0x305   : > { %v695_v52 = vperm.slane %v689_v12, %v2254_v41  ;;  %v699_v53 = vperm.slane %v691_v51, %v2254_v41  ;;  %v716_v54 = vrot.slane %v707_v49, 4  ;;  %v718_v56 = vrot.slane %v711_v50, 4 }
 0x307   : > { %v712_v60 = vrot.slane %v695_v52, 4  ;;  %v714_v62 = vrot.slane %v699_v53, 4  ;;  %v717_v63 = vsel %vm411_vm1, 0.0, %v716_v54  ;;  %v719_v47 = vsel %vm411_vm1, 0.0, %v718_v56  ;;  %v655_v57 = vpop.permute.xlu0 %654 }
 0x308   : > { %v787_v1 = vsel %vm411_vm1, %v718_v56, %v707_v49  ;;  %v792_v2 = vrot.slane %v719_v47, 4  ;;  %v732_v3 = vrot.slane %v655_v57, 4  ;;  %v735_v11 = vsel %vm411_vm1, %v655_v57, %v734_v58 }
 0x309   : > { %v713_v5 = vsel %vm411_vm1, 0.0, %v712_v60  ;;  %v715_v7 = vsel %vm411_vm1, 0.0, %v714_v62  ;;  %v776_v21 = vsel %vm411_vm1, %v714_v62, %v695_v52  ;;  %v791_v19 = vperm.slane %v787_v1, %v2246_v28 }
 0x30a   : > { %v780_v6 = vperm.slane %v776_v21, %v2246_v28  ;;  %v781_v9 = vrot.slane %v715_v7, 4  ;;  %v793_v10 = vsel %vm411_vm1, %v792_v2, %v717_v63  ;;  %v733_v13 = vsel %vm411_vm1, %v732_v3, %v2428_v0 }
 0x30b   : > { %v797_v15 = vperm.slane %v793_v10, %v2246_v28  ;;  %v812_v16 = vrot.slane %v791_v19, 4  ;;  %v739_v17 = vperm.slane %v733_v13, %v2246_v28  ;;  %v743_v18 = vperm.slane %v735_v11, %v2246_v28 }
 0x30c   : > { %v782_v24 = vsel %vm411_vm1, %v781_v9, %v713_v5  ;;  %v800_v25 = vrot.slane %v780_v6, 4 }
 0x30d   : > { %v786_v26 = vperm.slane %v782_v24, %v2246_v28  ;;  %v810_v27 = vrot.slane %v797_v15, 4  ;;  %v813_v29 = vsel %vm411_vm1, %v797_v15, %v812_v16  ;;  %v744_v30 = vrot.slane %v739_v17, 4 }
 0x30e   : > { %v821_v0 = vperm.slane %v813_v29, %v2254_v41  ;;  %v747_v31 = vsel %vm411_vm1, %v739_v17, %v746_v22  ;;  %v756_v33 = vrot.slane %v743_v18, 4  ;;  %v759_v34 = vsel %vm411_vm1, %v743_v18, %v758_v23 }
 0x30f   : > { %v798_v35 = vrot.slane %v786_v26, 4  ;;  %v801_v20 = vsel %vm411_vm1, %v786_v26, %v800_v25  ;;  %v811_v37 = vsel %vm411_vm1, %v810_v27, %v791_v19  ;;  %v745_v4 = vsel %vm411_vm1, %v744_v30, %v727_v55 }
 0x310   : > { %v809_v38 = vperm.slane %v801_v20, %v2254_v41  ;;  %v817_v39 = vperm.slane %v811_v37, %v2254_v41  ;;  %v826_v40 = vrot.slane %v821_v0, 4  ;;  %v751_v42 = vperm.slane %v745_v4, %v2254_v41 }
 0x311   : > { %v799_v43 = vsel %vm411_vm1, %v798_v35, %v780_v6  ;;  %v755_v44 = vperm.slane %v747_v31, %v2254_v41  ;;  %v757_v45 = vsel %vm411_vm1, %v756_v33, %v731_v59  ;;  %v767_v46 = vperm.slane %v759_v34, %v2254_v41 }
 0x312   : > { %v805_v61 = vperm.slane %v799_v43, %v2254_v41  ;;  %v822_v48 = vrot.slane %v817_v39, 4  ;;  %v827_v49 = vsel %vm411_vm1, %v826_v40, %v809_v38  ;;  %v828_v50 = vrot.slane %v809_v38, 4 }
 0x313   : > { %888 = vst.msk [vmem:[#allocation3 + $0x20] sm:$0xff] %vm631_vm2, %v827_v49  ;;  %v763_v12 = vperm.slane %v757_v45, %v2254_v41  ;;  %v768_v51 = vrot.slane %v751_v42, 4  ;;  %v770_v52 = vrot.slane %v755_v44, 4  ;;  %v774_v53 = vrot.slane %v767_v46, 4 }
 0x314   : > { %v823_v54 = vsel %vm411_vm1, %v822_v48, %v805_v61  ;;  %v824_v56 = vrot.slane %v805_v61, 4  ;;  %v829_v58 = vsel %vm411_vm1, %v821_v0, %v828_v50 }
 0x315   : > { %884 = vst.msk [vmem:[#allocation3] sm:$0xff] %vm631_vm2, %v823_v54  ;;  %v769_v55 = vsel %vm411_vm1, 0.0, %v768_v51  ;;  %v771_v59 = vsel %vm411_vm1, 0.0, %v770_v52  ;;  %v772_v60 = vrot.slane %v763_v12, 4  ;;  %v775_v62 = vsel %vm411_vm1, 0.0, %v774_v53 }
 0x316   : > { %v825_v63 = vsel %vm411_vm1, %v817_v39, %v824_v56  ;;  %890 = vst.msk [vmem:[#allocation3 + $0x30] sm:$0xff] %vm631_vm2, %v829_v58  ;;  %v830_v47 = vsel %vm411_vm1, %v770_v52, %v751_v42  ;;  %v835_v57 = vrot.slane %v771_v59, 4  ;;  %v841_v1 = vsel %vm411_vm1, %v774_v53, %v763_v12 }
 0x317   : > { %886 = vst.msk [vmem:[#allocation3 + $0x10] sm:$0xff] %vm631_vm2, %v825_v63  ;;  %v773_v2 = vsel %vm411_vm1, 0.0, %v772_v60  ;;  %v834_v3 = vperm.slane %v830_v47, %v2246_v28  ;;  %v845_v11 = vperm.slane %v841_v1, %v2246_v28  ;;  %v846_v5 = vrot.slane %v775_v62, 4 }
 0x318   : > { %v836_v7 = vsel %vm411_vm1, %v835_v57, %v769_v55 }
 0x319   : > { %v840_v21 = vperm.slane %v836_v7, %v2246_v28  ;;  %v847_v19 = vsel %vm411_vm1, %v846_v5, %v773_v2  ;;  %v854_v6 = vrot.slane %v834_v3, 4  ;;  %v866_v9 = vrot.slane %v845_v11, 4 }
 0x31a   : > { %v851_v10 = vperm.slane %v847_v19, %v2246_v28  ;;  %v1055_v40 = vld [vmem:[#allocation3 + $0x20] sm:$0xff] }
 0x31b   : > { %v852_v13 = vrot.slane %v840_v21, 4  ;;  %v855_v15 = vsel %vm411_vm1, %v840_v21, %v854_v6 }
 0x31c   : > { %v863_v16 = vperm.slane %v855_v15, %v2254_v41  ;;  %v864_v17 = vrot.slane %v851_v10, 4  ;;  %v867_v18 = vsel %vm411_vm1, %v851_v10, %v866_v9  ;;  %v1051_v43 = vld [vmem:[#allocation3] sm:$0xff] }
 0x31d   : > { %v853_v22 = vsel %vm411_vm1, %v852_v13, %v834_v3  ;;  %v875_v23 = vperm.slane %v867_v18, %v2254_v41  ;;  %v1057_v38 = vld [vmem:[#allocation3 + $0x30] sm:$0xff] }
 0x31e   : > { %v859_v24 = vperm.slane %v853_v22, %v2254_v41  ;;  %v865_v25 = vsel %vm411_vm1, %v864_v17, %v845_v11  ;;  %v882_v26 = vrot.slane %v863_v16, 4  ;;  %v1053_v42 = vld [vmem:[#allocation3 + $0x10] sm:$0xff] }
 0x31f   : > { %v871_v27 = vperm.slane %v865_v25, %v2254_v41  ;;  %v880_v29 = vrot.slane %v875_v23, 4 }
 0x320   : > { %v878_v30 = vrot.slane %v859_v24, 4  ;;  %v883_v0 = vsel %vm411_vm1, %v875_v23, %v882_v26 }
 0x321   : > { %v876_v31 = vrot.slane %v871_v27, 4  ;;  %v881_v33 = vsel %vm411_vm1, %v880_v29, %v863_v16  ;;  %891 = vst.msk [vmem:[#allocation3 + $0x38] sm:$0xff] %vm631_vm2, %v883_v0 }
 0x322   : > { %v879_v34 = vsel %vm411_vm1, %v871_v27, %v878_v30  ;;  %889 = vst.msk [vmem:[#allocation3 + $0x28] sm:$0xff] %vm631_vm2, %v881_v33 }
 0x323   : > { %v877_v35 = vsel %vm411_vm1, %v876_v31, %v859_v24  ;;  %887 = vst.msk [vmem:[#allocation3 + $0x18] sm:$0xff] %vm631_vm2, %v879_v34 }
 0x324   : > { %885 = vst.msk [vmem:[#allocation3 + $0x8] sm:$0xff] %vm631_vm2, %v877_v35 }
 0x328   : > { %v1058_v20 = vld [vmem:[#allocation3 + $0x38] sm:$0xff] }
 0x329   : > { %v1056_v37 = vld [vmem:[#allocation3 + $0x28] sm:$0xff]  ;;  %1359 = vmatpush.msra.mxu2 %v1058_v20 }
 0x32a   : > { %1336 = vmatpush.msra.mxu1 %v1056_v37  ;;  %v1054_v4 = vld [vmem:[#allocation3 + $0x18] sm:$0xff] }
 0x32b   : > { %v1052_v39 = vld [vmem:[#allocation3 + $0x8] sm:$0xff]  ;;  %1313 = vmatpush.msrb.mxu0 %v1054_v4  ;;  %1360 = vmatpush.msra.mxu2 %v1057_v38 }
 0x32c   : > { %1290 = vmatpush.msrb.mxu3 %v1052_v39  ;;  %1337 = vmatpush.msra.mxu1 %v1055_v40 }
 0x32d   : > { %1314 = vmatpush.msrb.mxu0 %v1053_v42 }
 0x32e   : > { %1291 = vmatpush.msrb.mxu3 %v1051_v43 }
 0x364   : > { %v1209_v44 = vpop.xlane.xlu2 %1208 }
 0x365   : > { %1822 = vrcp.f32 %v1209_v44  ;;  %v1254_v49 = vand.u32 2147483648, %v1209_v44  ;;  %v1252_v12 = vand.u32 2147483647, %v1209_v44  ;;  %vm1248_vm5 = vweird.f32 %v1209_v44 }
 0x367   : > { %v1255_v53 = vor.u32 1.1754944e-38, %v1254_v49  ;;  %vm1253_vm7 = vcmp.eq.f32.partialorder %v1252_v12, 8.507059e+37 }
 0x36b   : > { %v1823_v45 = vpop.eup %1822 }
 0x36c   : > { %v1244_v46 = vmul.f32 %v1823_v45, %v1209_v44  ;;  %v1203_v61 = vpop.xlane.xlu1 %1202  ;;  %vm1249_vm4 = vweird.f32 %v1823_v45 }
 0x36d   : > { %1824 = vrcp.f32 %v1203_v61  ;;  %vm1250_vm6 = vmor %vm1248_vm5, %vm1249_vm4  ;;  %v1224_v62 = vand.u32 2147483648, %v1203_v61  ;;  %v1222_v47 = vand.u32 2147483647, %v1203_v61  ;;  %vm1218_vm9 = vweird.f32 %v1203_v61 }
 0x36e   : > { %v1245_v48 = vsub.f32 1.0, %v1244_v46 }
 0x36f   : > { %v1225_v2 = vor.u32 1.1754944e-38, %v1224_v62  ;;  %vm1223_vm11 = vcmp.eq.f32.partialorder %v1222_v47, 8.507059e+37 }
 0x370   : > { %v1246_v50 = vmul.f32 %v1823_v45, %v1245_v48 }
 0x372   : > { %v1247_v51 = vadd.f32 %v1823_v45, %v1246_v50 }
 0x373   : > { %v1825_v52 = vpop.eup %1824 }
 0x374   : > { %v1251_v54 = vsel %vm1250_vm6, %v1823_v45, %v1247_v51  ;;  %v1214_v56 = vmul.f32 %v1825_v52, %v1203_v61  ;;  %vm1219_vm8 = vweird.f32 %v1825_v52 }
 0x375   : > { %v1256_v58 = vsel %vm1253_vm7, %v1255_v53, %v1251_v54  ;;  %v1206_v55 = vpop.xlane.xlu1 %1205  ;;  %v1212_v59 = vpop.xlane.xlu0 %1211  ;;  %vm1220_vm10 = vmor %vm1218_vm9, %vm1219_vm8  ;;  %vm1489_vm8 = vcmask 195584  }
 0x376   : > { %v1215_v60 = vsub.f32 1.0, %v1214_v56  ;;  %1826 = vrcp.f32 %v1206_v55  ;;  %v1257_v57 = vmul.f32 %v2430_v8, %v1256_v58  ;;  %v1239_v10 = vand.u32 2147483648, %v1206_v55 }
 0x377   : > { %1828 = vrcp.f32 %v1212_v59  ;;  %v1237_v15 = vand.u32 2147483647, %v1206_v55  ;;  %v1269_v16 = vand.u32 2147483648, %v1212_v59  ;;  %v1267_v18 = vand.u32 2147483647, %v1212_v59 }
 0x378   : > { %v1216_v63 = vmul.f32 %v1825_v52, %v1215_v60  ;;  %1696 = vmatmul.msk.f32.vlgmr.msra.gmra.mxu1 %vm1176_vm3, %v1257_v57  ;;  %vm1233_vm14 = vweird.f32 %v1206_v55  ;;  %v1240_v23 = vor.u32 1.1754944e-38, %v1239_v10  ;;  %vm1263_vm4 = vweird.f32 %v1212_v59 }
 0x379   : > { %vm1238_vm5 = vcmp.eq.f32.partialorder %v1237_v15, 8.507059e+37  ;;  %vm1268_vm7 = vcmp.eq.f32.partialorder %v1267_v18, 8.507059e+37 }
 0x37a   : > { %v1217_v1 = vadd.f32 %v1825_v52, %v1216_v63 }
 0x37c   : > { %v1827_v3 = vpop.eup %1826  ;;  %v1221_v11 = vsel %vm1220_vm10, %v1825_v52, %v1217_v1 }
 0x37d   : > { %v1829_v5 = vpop.eup %1828  ;;  %v1229_v7 = vmul.f32 %v1827_v3, %v1206_v55  ;;  %v1226_v21 = vsel %vm1223_vm11, %v1225_v2, %v1221_v11  ;;  %vm1234_vm12 = vweird.f32 %v1827_v3 }
 0x37e   : > { %v1259_v19 = vmul.f32 %v1829_v5, %v1212_v59  ;;  %v1227_v6 = vmul.f32 %v2434_v14, %v1226_v21  ;;  %vm1264_vm13 = vweird.f32 %v1829_v5  ;;  %vm1235_vm15 = vmor %vm1233_vm14, %vm1234_vm12  ;;  %v1270_v14 = vor.u32 1.1754944e-38, %v1269_v16 }
 0x37f   : > { %v1230_v9 = vsub.f32 1.0, %v1229_v7  ;;  %vm1265_vm6 = vmor %vm1263_vm4, %vm1264_vm13 }
 0x380   : > { %v1260_v13 = vsub.f32 1.0, %v1259_v19  ;;  %1694 = vmatmul.msk.f32.vlgmr.msrb.gmra.mxu3 %vm1176_vm3, %v1227_v6 }
 0x381   : > { %v1231_v8 = vmul.f32 %v1827_v3, %v1230_v9 }
 0x382   : > { %v1261_v17 = vmul.f32 %v1829_v5, %v1260_v13 }
 0x383   : > { %v1232_v22 = vadd.f32 %v1827_v3, %v1231_v8 }
 0x384   : > { %v1262_v24 = vadd.f32 %v1829_v5, %v1261_v17 }
 0x385   : > { %v1236_v25 = vsel %vm1235_vm15, %v1827_v3, %v1232_v22 }
 0x386   : > { %v1266_v26 = vsel %vm1265_vm6, %v1829_v5, %v1262_v24  ;;  %v1241_v27 = vsel %vm1238_vm5, %v1240_v23, %v1236_v25 }
 0x387   : > { %v1271_v29 = vsel %vm1268_vm7, %v1270_v14, %v1266_v26  ;;  %v1242_v30 = vmul.f32 %v2442_v32, %v1241_v27 }
 0x388   : > { %v1272_v0 = vmul.f32 %v2446_v36, %v1271_v29 }
 0x389   : > { %1695 = vmatmul.msk.f32.vlgmr.msrb.gmra.mxu0 %vm1176_vm3, %v1242_v30 }
 0x38a   : > { %1697 = vmatmul.msk.f32.vlgmr.msra.gmra.mxu2 %vm1176_vm3, %v1272_v0 }
 0x3f5   : > { %v1339_v34 = vpop.f32.mrf.mxu1 }
 0x3f6   : > { %v1365_v35 = vrot.slane %v1339_v34, 4 }
 0x403   : > { %v1293_v31 = vpop.f32.mrf.mxu3 }
 0x404   : > { %v1367_v33 = vrot.slane %v1293_v31, 4  ;;  %v1366_v4 = vsel %vm411_vm1, %v1365_v35, %v1293_v31  ;;  %v1494_v35 = vld [vmem:[#allocation10 + $0x18] sm:$0xff] }
 0x405   : > { %v1372_v32 = vperm.slane %v1366_v4, %v2246_v28  ;;  %1514 = vmatpush.msra.mxu3 %v1494_v35 }
 0x406   : > { %v1368_v20 = vsel %vm411_vm1, %v1339_v34, %v1367_v33  ;;  %v1316_v37 = vpop.f32.mrf.mxu0 }
 0x407   : > { %v1376_v38 = vperm.slane %v1368_v20, %v2246_v28  ;;  %v1379_v39 = vrot.slane %v1316_v37, 4  ;;  %v1391_v46 = vrot.slane %v1372_v32, 4  ;;  %v1493_v20 = vld [vmem:[#allocation10 + $0x10] sm:$0xff] }
 0x408   : > { %1515 = vmatpush.msra.mxu3 %v1493_v20 }
 0x409   : > { %v1403_v43 = vrot.slane %v1376_v38, 4 }
 0x40d   : > { %v1362_v40 = vpop.f32.mrf.mxu2 }
 0x40e   : > { %v1377_v36 = vrot.slane %v1362_v40, 4  ;;  %v1380_v42 = vsel %vm411_vm1, %v1362_v40, %v1379_v39 }
 0x40f   : > { %v1388_v44 = vperm.slane %v1380_v42, %v2246_v28  ;;  %v1813_v42 = vld [vmem:[%s2635_s4] ss:$0 sm:$0xff] }
 0x410   : > { %v1378_v45 = vsel %vm411_vm1, %v1377_v36, %v1316_v37  ;;  %v1491_v37 = vld [vmem:[#allocation10] sm:$0xff] }
 0x411   : > { %v1384_v61 = vperm.slane %v1378_v45, %v2246_v28  ;;  %v1401_v48 = vrot.slane %v1388_v44, 4  ;;  %v1404_v49 = vsel %vm411_vm1, %v1388_v44, %v1403_v43 }
 0x412   : > { %v1412_v50 = vperm.slane %v1404_v49, %v2254_v41 }
 0x413   : > { %v1389_v12 = vrot.slane %v1384_v61, 4  ;;  %v1392_v51 = vsel %vm411_vm1, %v1384_v61, %v1391_v46  ;;  %v1402_v52 = vsel %vm411_vm1, %v1401_v48, %v1376_v38 }
 0x414   : > { %v1400_v53 = vperm.slane %v1392_v51, %v2254_v41  ;;  %v1408_v54 = vperm.slane %v1402_v52, %v2254_v41  ;;  %v1419_v56 = vrot.slane %v1412_v50, 4 }
 0x415   : > { %v1390_v58 = vsel %vm411_vm1, %v1389_v12, %v1372_v32 }
 0x416   : > { %v1396_v55 = vperm.slane %v1390_v58, %v2254_v41  ;;  %v1415_v59 = vrot.slane %v1400_v53, 4  ;;  %v1417_v60 = vrot.slane %v1408_v54, 4  ;;  %v1420_v62 = vsel %vm411_vm1, 0.0, %v1419_v56 }
 0x417   : > { %v1432_v63 = vsel %vm411_vm1, %v1419_v56, %v1408_v54  ;;  %v1437_v47 = vrot.slane %v1420_v62, 4 }
 0x418   : > { %v1413_v57 = vrot.slane %v1396_v55, 4  ;;  %v1416_v1 = vsel %vm411_vm1, 0.0, %v1415_v59  ;;  %v1418_v2 = vsel %vm411_vm1, 0.0, %v1417_v60  ;;  %v1436_v3 = vperm.slane %v1432_v63, %v2246_v28 }
 0x419   : > { %v1426_v11 = vrot.slane %v1416_v1, 4  ;;  %v1421_v5 = vsel %vm411_vm1, %v1415_v59, %v1396_v55  ;;  %v1438_v7 = vsel %vm411_vm1, %v1437_v47, %v1418_v2 }
 0x41a   : > { %v1414_v21 = vsel %vm411_vm1, 0.0, %v1413_v57  ;;  %v1425_v19 = vperm.slane %v1421_v5, %v2246_v28  ;;  %v1442_v6 = vperm.slane %v1438_v7, %v2246_v28  ;;  %v1457_v9 = vrot.slane %v1436_v3, 4 }
 0x41b   : > { %v1427_v10 = vsel %vm411_vm1, %v1426_v11, %v1414_v21 }
 0x41c   : > { %v1431_v13 = vperm.slane %v1427_v10, %v2246_v28  ;;  %v1445_v8 = vrot.slane %v1425_v19, 4  ;;  %v1458_v15 = vsel %vm411_vm1, %v1442_v6, %v1457_v9  ;;  %v1455_v16 = vrot.slane %v1442_v6, 4 }
 0x41d   : > { %v1466_v17 = vperm.slane %v1458_v15, %v2254_v41 }
 0x41e   : > { %v1446_v18 = vsel %vm411_vm1, %v1431_v13, %v1445_v8  ;;  %v1443_v22 = vrot.slane %v1431_v13, 4  ;;  %v1456_v23 = vsel %vm411_vm1, %v1455_v16, %v1436_v3 }
 0x41f   : > { %v1454_v24 = vperm.slane %v1446_v18, %v2254_v41  ;;  %v1471_v14 = vrot.slane %v1466_v17, 4  ;;  %v1462_v25 = vperm.slane %v1456_v23, %v2254_v41 }
 0x420   : > { %v1444_v26 = vsel %vm411_vm1, %v1443_v22, %v1425_v19 }
 0x421   : > { %v1472_v28 = vsel %vm411_vm1, %v1471_v14, %v1454_v24  ;;  %v1473_v27 = vrot.slane %v1454_v24, 4  ;;  %v1450_v29 = vperm.slane %v1444_v26, %v2254_v41  ;;  %v1467_v30 = vrot.slane %v1462_v25, 4  ;;  %v1492_v41 = vld [vmem:[#allocation10 + $0x8] sm:$0xff] }
 0x422   : > { %1480 = vrot.lane.b32.xlu2 %v1472_v28, %s2056_s12  ;;  %1516 = vmatpush.msra.mxu3 %v1492_v41 }
 0x423   : > { %v1474_v0 = vsel %vm411_vm1, %v1466_v17, %v1473_v27  ;;  %v1469_v31 = vrot.slane %v1450_v29, 4  ;;  %v1468_v33 = vsel %vm411_vm1, %v1467_v30, %v1450_v29 }
 0x424   : > { %1484 = vrot.lane.b32.xlu1 %v1474_v0, %s2057_s17  ;;  %1517 = vmatpush.msra.mxu3 %v1491_v37 }
 0x425   : > { %v1470_v34 = vsel %vm411_vm1, %v1462_v25, %v1469_v31 }
 0x426   : > { %1476 = vrot.lane.b32.xlu0 %v1470_v34, %s2058_s13 }
 0x47c   : > { %v1481_v38 = vpop.permute.xlu2 %1480 }
 0x496   : > { %v1485_v32 = vpop.permute.xlu1 %1484 }
 0x498   : > { %v1477_v4 = vpop.permute.xlu0 %1476 }
 0x499   : > { %v1487_v39 = vsel %vm631_vm2, %v1468_v33, %v1477_v4 }
 0x49a   : > { %v1488_v40 = vsel %vm1176_vm3, %v1487_v39, %v1481_v38 }
 0x49b   : > { %v1490_v36 = vsel %vm1489_vm8, %v1488_v40, %v1485_v32 }
 0x49c   : > { %1698 = vmatmul.msk.f32.vlgmr.msra.gmra.mxu3 %vm360_vm0, %v1490_v36 }
 0x51f   : > { %v1519_v43 = vpop.f32.mrf.mxu3 }
 0x520   : > { %v1520_v44 = vadd.f32 %v1813_v42, %v1519_v43 }
 0x522   : > { %1522 = vst.msk [vmem:[%s333_s20] sm:$0xff] %vm360_vm0, %v1520_v44 }
 0x523   : > { %1977 = shalt.err (!%p1974_p13)
}
 0x524   : > { %1716 = dma.vmem_to_hbm [thread:$0]  (%p2169_p2), %s1538_s14, 128, %s1540_s3, %s1524_s21  }
 0x525 PF: > { %s1551_s30 = sand.u32 1, %s2024_s18   ;;  %p1733_p0 = pnand %p1667_p6, %p2176_p5 }
 0x526   : > { %s1552_s12 = scalar_lea.sflag [#allocation6], %s1551_s30 }
 0x527   : > { %p1734_p4 = pneg %p1733_p0 }
 0x529   : > { %2019 = dma.done.wait (%p1734_p4), %s1552_s12, 128  }
 0x52a   : > { %2021 = vsyncadd (%p1734_p4), %s1552_s12, 4294967168  ;;  %s25_s23 = sadd.s32 1, %s2044_s23   ;;  %s2658_s17 = sld [smem:[#allocation18_spill]] }
 0x52b   : > { %p22_p7 = scmp.ge.s32.totalorder %s25_s23, 4   ;;  %s2659_s20 = sld [smem:[#allocation20_spill]] }
 0x52c   : > { %s2660_s26 = sld [smem:[#allocation19_spill]]  ;;  %s2661_s18 = smov %s2028_s19 }
 0x52d   : > { %s2663_s21 = smov %s2040_s22 }
 0x52e   :  { %24 = sbr.rel (!%p22_p7) target bundleno = 12 (0xc), region = 110 }
 0x530   : > { %s2662_s19 = smov %s2658_s17 }
 0x532   : > { %s2664_s22 = smov %s2660_s26 }
 0x533   :  { %1558 = vsyncpa [#allocation5], 1 }
 0x534   :  { %1560 = vsyncpa [#allocation5 + $0x1], 1 }
 0x535   :  { %1561 = vsyncpa [#allocation8], 1 }
 0x536   :  { %1563 = vsyncpa [#allocation8 + $0x1], 1 }
 0x537   :  { %1564 = vsyncpa [#allocation11], 1 }
 0x538   :  { %1565 = vsyncpa [#allocation6], 1 }
 0x539   :  { %1567 = vsyncpa [#allocation6 + $0x1], 1 }

// kernel: tpu_custom_call.1
= control target key start
LH: loop header
LB: loop body
LE: loop exit
PB: predicated region body
PF: predicated region fallthrough
CT: control target
= control target key end

     0   :  { %s2631_s0 = inlined_call_operand.hbm [shape: f32[2,8,32], index: 0, kind: input, shape index: {}]   ;;  %s2632_s1 = inlined_call_operand.hbm [shape: f32[2,16,32], index: 1, kind: input, shape index: {}]   ;;  %s2633_s2 = inlined_call_operand.hbm [shape: f32[32,96], index: 2, kind: input, shape index: {}]   ;;  %s2634_s3 = inlined_call_operand.hbm [shape: f32[32,32], index: 3, kind: input, shape index: {}]   ;;  %s2635_s4 = inlined_call_operand.vmem [shape: f32[1,32], index: 4, kind: input, shape index: {}]   ;;  %s2636_s5 = inlined_call_operand.hbm [shape: f32[2,8,32], index: 5, kind: output, shape index: {}]  }
   0x1   :  { %2642 = sst [smem:[#allocation22_spill]] %s2633_s2 }
   0x2   :  { %2643 = sst [smem:[#allocation23_spill]] %s2634_s3 }
   0x3   :  { %10 = vsyncpa [#allocation5], 0 }
   0x4   :  { %12 = vsyncpa [#allocation5 + $0x1], 0 }
   0x5   :  { %13 = vsyncpa [#allocation8], 0 }
   0x6   :  { %15 = vsyncpa [#allocation8 + $0x1], 0 }
   0x7   :  { %16 = vsyncpa [#allocation11], 0 }
   0x8   :  { %17 = vsyncpa [#allocation6], 0 }
   0x9   :  { %19 = vsyncpa [#allocation6 + $0x1], 0  ;;  %s2089_s18 = smov 0   ;;  %s2091_s19 = smov 0  }
   0xa   :  { %s2093_s20 = smov 0   ;;  %s2095_s21 = smov 0  }
   0xb   :  { %s2097_s22 = smov 0   ;;  %s2099_s23 = smov 0  }
   0xc LB: > { %2644 = sst [smem:[#allocation18_spill]] %s2032_s20  ;;  %s2120_s24 = sadd.s32 4294967295, %s2044_s23   ;;  %s2044_s23 = sphi %s2099_s23, %s25_s23   ;;  %s2040_s22 = sphi %s2097_s22, %s2664_s22   ;;  %s2036_s21 = sphi %s2095_s21, %s2663_s21   ;;  %s2032_s20 = sphi %s2093_s20, %s2659_s20   ;;  %s2028_s19 = sphi %s2091_s19, %s2662_s19   ;;  %s2024_s18 = sphi %s2089_s18, %s2661_s18  }
   0xd   : > { %p1664_p0 = scmp.ge.s32.totalorder %s2044_s23, 1  ;;  %p60_p1 = scmp.eq.s32.totalorder %s2120_s24, 0 }
   0xe   : > { %p187_p2 = scmp.lt.s32.totalorder %s2044_s23, 3  ;;  %s2645_s2 = sld [smem:[#allocation22_spill]] }
   0xf   : > { %s2046_s29 = smov [#allocation9]   ;;  %p1667_p6 = scmp.ge.s32.totalorder %s2044_s23, 2 }
  0x10   : > { %p2128_p3 = pnand %p1664_p0, %p187_p2  ;;  %s200_s30 = sshll.u32 %s2046_s29, 4  ;;  %s201_s30 = int_to_ptr.vmem [resolvable:$true] %s200_s30 }
  0x11   : > { %s2647_s3 = sld [smem:[#allocation23_spill]]  ;;  %s2637_s9 = smov 128  }
  0x12   : > { %p1718_p4 = pneg %p2128_p3  ;;  %s2638_s10 = smov 8  }
  0x13   : > { %s2049_s11 = smov [#allocation10]   ;;  %s1663_s13 = sadd.s32 4294967294, %s2044_s23  }
  0x14   : > { %s198_s27 = sshll.u32 %s2645_s2, 4  ;;  %p1719_p5 = pnand %p1718_p4, %p60_p1  ;;  %s199_s27 = int_to_ptr.hbm [resolvable:$true] %s198_s27 }
  0x15   : > { %s214_s12 = sshll.u32 %s2049_s11, 4  ;;  %s37_s14 = sadd.s32 1, %s2040_s22  ;;  %s215_s12 = int_to_ptr.vmem [resolvable:$true] %s214_s12 }
  0x16   : > { %1721 = dma.hbm_to_vmem [thread:$0]  (!%p1719_p5), %s199_s27, 512, %s201_s30, [#allocation8], %s2637_s9, %s2637_s9, %s2638_s10  }
  0x17   : > { %s212_s8 = sshll.u32 %s2647_s3, 4  ;;  %p39_p7 = scmp.ge.s32.totalorder %s37_s14, 2  ;;  %s213_s8 = int_to_ptr.hbm [resolvable:$true] %s212_s8 }
  0x18   : > { %1724 = dma.hbm_to_vmem [thread:$0]  (!%p1719_p5), %s213_s8, 512, %s215_s12, [#allocation11], %s2637_s9, %s2637_s9, %s2638_s10  }
  0x19   : > { %s46_s15 = sadd.s32 1, %s2032_s20  ;;  %p53_p8 = scmp.ne.s32.totalorder %s2032_s20, %s2028_s19 }
  0x1a   : > { %p54_p9 = scmp.eq.s32.totalorder %s2044_s23, 0  ;;  %s2666_s14 = smov (%p39_p7, %s37_s14), 0 }
  0x1b   : > { %2648 = sst [smem:[#allocation19_spill]] %s2666_s14  ;;  %p59_p11 = scmp.ne.s32.totalorder %s2028_s19, %s2024_s18 }
  0x1c   : > { %p2154_p10 = por %p54_p9, %p53_p8  ;;  %s41_s17 = ssub.s32 %s2040_s22, %s2666_s14 }
  0x1d   : > { %p174_p12 = scmp.eq.s32.totalorder %s2120_s24, 1  ;;  %p44_p13 = scmp.eq.s32.totalorder %s41_s17, 0 }
  0x1e   : > { %p2165_p0 = por %p60_p1, %p59_p11  ;;  %p180_p4 = scmp.eq.s32.totalorder %s1663_s13, 1 }
  0x1f   : > { %p2169_p2 = por %p174_p12, %p53_p8  ;;  %p1738_p7 = scmp.lt.s32.totalorder %s2044_s23, 2 }
  0x20   : > { %s2174_s27 = scalar_select %p44_p13, %s2032_s20, %s46_s15  }
  0x21   : > { %p2176_p5 = por %p180_p4, %p59_p11  ;;  %s231_s30 = sand.u32 1, %s2032_s20  }
  0x22   : > { %2652 = sst [smem:[#allocation20_spill]] %s2174_s27  ;;  %s1669_s6 = sshll.u32 %s2040_s22, 3 }
  0x23   : > { %s2653_s29 = scalar_select %p2176_p5, 1, 0 }
  0x24   : > { %s1668_s7 = sshll.u32 %s231_s30, 3  ;;  %s240_s12 = scalar_lea.hbm %s2631_s0, %s1669_s6 }
  0x25   : > { %2654 = sst [smem:[#allocation21_spill]] %s2653_s29  ;;  %s242_s17 = sshll.u32 %s240_s12, 4  ;;  %s243_s17 = int_to_ptr.hbm [resolvable:$true] %s242_s17 }
  0x26   : > { %s235_s9 = scalar_lea.vmem [#allocation4], %s1668_s7  ;;  %p1726_p8 = pnand %p1738_p7, %p2154_p10 }
  0x27   : > { %s244_s10 = sshll.u32 %s235_s9, 4  ;;  %s1670_s13 = sshll.u32 %s231_s30, 4  ;;  %s245_s10 = int_to_ptr.vmem [resolvable:$true] %s244_s10 }
  0x28   : > { %s1703_s15 = sshll.u32 %s2040_s22, 4  ;;  %s255_s2 = scalar_lea.vmem [#allocation7], %s1670_s13 }
  0x29   : > { %s263_s3 = sshll.u32 %s255_s2, 4  ;;  %s232_s14 = scalar_lea.sflag [#allocation5], %s231_s30  ;;  %s264_s3 = int_to_ptr.vmem [resolvable:$true] %s263_s3 }
  0x2a   : > { %1728 = dma.hbm_to_vmem [thread:$0]  (!%p1726_p8), %s243_s17, 128, %s245_s10, %s232_s14  }
  0x2b   : > { %s251_s27 = sand.u32 1, %s2044_s23   ;;  %s260_s8 = scalar_lea.hbm %s2632_s1, %s1703_s15 }
  0x2c   : > { %s261_s6 = sshll.u32 %s260_s8, 4  ;;  %s252_s7 = scalar_lea.sflag [#allocation8], %s251_s27  ;;  %s262_s6 = int_to_ptr.hbm [resolvable:$true] %s261_s6 }
  0x2d   : > { %s2655_s9 = smov 8   ;;  %s2656_s11 = smov 128  }
  0x2e   : > { %1731 = dma.hbm_to_vmem [thread:$0]  (!%p1726_p8), %s262_s6, 256, %s264_s3, %s252_s7, %s2656_s11, %s2656_s11, %s2655_s9  }
  0x2f   : > { %275 = sbr.rel (%p2128_p3) target bundleno = 1317 (0x525), region = 40  ;;  %s2199_s2 = sand.u32 (!%p2128_p3), 1, %s2028_s19  }
  0x30   : > { %s1674_s10 = sshll.u32 (!%p2128_p3), %s2199_s2, 3  ;;  %s278_s20 = scalar_lea.sflag (!%p2128_p3), [#allocation5], %s2199_s2 }
  0x31   : > { %s281_s14 = scalar_lea.vmem (!%p2128_p3), [#allocation4], %s1674_s10 }
  0x34   : > { %2003 = dma.done.wait (%p2165_p0), %s278_s20, 128  }
  0x35   : > { %2005 = vsyncadd (%p2165_p0), %s278_s20, 4294967168  ;;  %s287_s3 = sand.u32 1, %s2120_s24   ;;  %s1675_s28 = sshll.u32 %s2199_s2, 4 }
  0x36   : > { %s288_s16 = scalar_lea.sflag [#allocation8], %s287_s3  ;;  %s2211_s27 = scalar_lea.vmem [#allocation7], %s1675_s28 }
  0x37   : > { %2007 = dma.done.wait (%p2165_p0), %s288_s16, 256  }
  0x38   : > { %2009 = vsyncadd (%p2165_p0), %s288_s16, 4294967040 }
  0x39   : > { %2011 = dma.done.wait (%p60_p1), [#allocation8], 512  }
  0x3a   : > { %2013 = vsyncadd (%p60_p1), [#allocation8], 4294966784 }
  0x3b   : > { %2015 = dma.done.wait (%p60_p1), [#allocation11], 512  }
  0x3c   : > { %2017 = vsyncadd (%p60_p1), [#allocation11], 4294966784  ;;  %v342_v0 = vld [vmem:[#allocation9 + $0x10] sm:$0xff]  ;;  %v343_v1 = vld [vmem:[#allocation9 + $0x18] sm:$0xff]  ;;  %s2050_s29 = smov 96   ;;  %vm360_vm0 = vcmask 261120  }
  0x3d   : > { %v1803_v2 = vpack.i.bf16 %v342_v0, %v343_v1  ;;  %913 = vmatpush.msra.mxu1 %v343_v1  ;;  %v340_v3 = vld [vmem:[#allocation9] sm:$0xff]  ;;  %v341_v4 = vld [vmem:[#allocation9 + $0x8] sm:$0xff]  ;;  %v892_v6 = vld [vmem:[%s281_s14] sm:$0xff]  ;;  %s2051_s24 = smov 112   ;;  %s2052_s25 = smov 104   ;;  %vm411_vm1 = vcmask 1047556  }
  0x3e   : > { %v1808_v5 = vpack.i.bf16 %v340_v3, %v341_v4  ;;  %v338_v13 = vld [vmem:[%s2211_s27] sm:$0xff]  ;;  %v339_v14 = vld [vmem:[%s2211_s27 + $0x8] sm:$0xff]  ;;  %s2053_s30 = smov 120   ;;  %v2054_v22 = vmov 1983009808   ;;  %vm631_vm2 = vcmask 64512  }
  0x3f   : > { %1804 = vrot.lane.b32.xlu0 %v1803_v2, %s2050_s29  ;;  %914 = vmatpush.msra.mxu1 %v342_v0  ;;  %v416_v23 = vunpack.c.l.s4 %v2054_v22  ;;  %v2055_v30 = vmov 1934713408   ;;  %vm1176_vm3 = vcmask 130048   ;;  %s2056_s12 = smov 16   ;;  %s2057_s17 = smov 24  }
  0x40   : > { %v440_v31 = vunpack.c.l.s4 %v2055_v30  ;;  %s2058_s13 = smov 8   ;;  %s1700_s15 = sshll.u32 %s2036_s21, 3 }
  0x41   : > { %915 = vmatpush.msra.mxu1 %v341_v4  ;;  %v2246_v28 = vunpack.c.0.s8 %v416_v23  ;;  %s1535_s7 = scalar_lea.hbm %s2636_s5, %s1700_s15  ;;  %s333_s20 = scalar_lea.vmem [#allocation12], %s1674_s10 }
  0x42   : > { %v2254_v41 = vunpack.c.0.s8 %v440_v31  ;;  %s1537_s14 = sshll.u32 %s333_s20, 4  ;;  %s1539_s3 = sshll.u32 %s1535_s7, 4  ;;  %s1538_s14 = int_to_ptr.vmem [resolvable:$true] %s1537_s14  ;;  %s1540_s3 = int_to_ptr.hbm [resolvable:$true] %s1539_s3 }
  0x43   : > { %916 = vmatpush.msra.mxu1 %v340_v3  ;;  %s1524_s21 = scalar_lea.sflag [#allocation6], %s2199_s2  ;;  %s1964_s28 = sshra.s32 %s1540_s3, 4  ;;  %s1965_s28 = int_to_ptr.hbm [resolvable:$true] %s1964_s28 }
  0x44   : > { %1681 = vmatmul.msk.f32.vlgmr.msra.gmra.mxu1 %vm360_vm0, %v892_v6  ;;  %s1966_s16 = scalar_lea.hbm %s1965_s28, 8  ;;  %s1970_s10 = scalar_lea.hbm %s2636_s5, 16 }
  0x45   : > { %p1967_p1 = scmp.ne.s32.totalorder %s1965_s28, %s1966_s16  ;;  %p1971_p10 = scmp.lt.s32.totalorder %s1965_s28, %s2636_s5 }
  0x46   : > { %p1972_p11 = scmp.lt.s32.totalorder %s1970_s10, %s1966_s16 }
  0x47   : > { %1809 = vrot.lane.b32.xlu0 %v1808_v5, %s2050_s29  ;;  %p1968_p3 = pnand %p1967_p1, %p2169_p2 }
  0x48   : > { %p1973_p12 = por %p1972_p11, %p1971_p10 }
  0x49   : > { %p1969_p9 = pneg %p1968_p3 }
  0x4b   : > { %p1974_p13 = pnand %p1973_p12, %p1969_p9 }
  0xb1   : > { %v1805_v7 = vpop.permute.xlu0 %1804 }
  0xb2   : > { %v1806_v8 = vunpack.i.l.bf16 %v1805_v7  ;;  %v1807_v9 = vunpack.i.h.bf16 %v1805_v7 }
  0xb4   : > { %379 = vmatpush.msra.mxu0 %v1806_v8 }
  0xb6   : > { %380 = vmatpush.msra.mxu0 %v1807_v9 }
  0xb9   : > { %v1810_v10 = vpop.permute.xlu0 %1809 }
  0xba   : > { %v1811_v11 = vunpack.i.l.bf16 %v1810_v10  ;;  %v1812_v12 = vunpack.i.h.bf16 %v1810_v10 }
  0xbc   : > { %381 = vmatpush.msra.mxu0 %v1811_v11 }
  0xbe   : > { %382 = vmatpush.msra.mxu0 %v1812_v12 }
  0xbf   : > { %1679 = vmatmul.msk.f32.vlgmr.msra.gmra.mxu0 %vm360_vm0, %v338_v13 }
  0xc1   : > { %v918_v16 = vpop.f32.mrf.mxu1 }
  0xc2   : > { %v921_v17 = vmul.f32 0.35355338, %v918_v16 }
  0xc4   : > { %v935_v40 = vrot.slane %v921_v17, 4 }
  0xc7   : > { %1680 = vmatmul.msk.f32.gmra.mxu0 %vm360_vm0, %v339_v14 }
 0x13c   : > { %v384_v15 = vpop.f32.mrf.mxu0 }
 0x13d   : > { %398 = vrot.lane.b32.xlu0 %v384_v15, %s2051_s24  ;;  %v413_v33 = vrot.slane %v384_v15, 4 }
 0x144   : > { %v387_v18 = vpop.f32.mrf.mxu0 }
 0x145   : > { %926 = vrot.lane.b32.xlu0 %v921_v17, %s2051_s24  ;;  %406 = vrot.lane.b32.xlu2 %v387_v18, %s2052_s25  ;;  %v469_v35 = vrot.slane %v387_v18, 4 }
 0x146   : > { %394 = vrot.lane.b32.xlu1 %v387_v18, %s2053_s30 }
 0x14d   : > { %640 = vrot.lane.b32.xlu0 %v384_v15, %s2050_s29  ;;  %392 = vrot.lane.b32.xlu2 %v384_v15, %s2053_s30 }
 0x14e   : > { %400 = vrot.lane.b32.xlu1 %v387_v18, %s2051_s24 }
 0x155   : > { %923 = vrot.lane.b32.xlu2 %v921_v17, %s2053_s30 }
 0x156   : > { %404 = vrot.lane.b32.xlu1 %v384_v15, %s2052_s25 }
 0x15d   : > { %642 = vrot.lane.b32.xlu2 %v387_v18, %s2050_s29 }
 0x15e   : > { %929 = vrot.lane.b32.xlu1 %v921_v17, %s2052_s25 }
 0x19f   : > { %v2234_v19 = vpop.permute.xlu2 %406 }
 0x1a0   : > { %v479_v26 = vrot.slane %v2234_v19, 4 }
 0x1a7   : > { %v2236_v20 = vpop.permute.xlu2 %392 }
 0x1a8   : > { %644 = vrot.lane.b32.xlu2 %v2236_v20, %s2050_s29  ;;  %v425_v2 = vrot.slane %v2236_v20, 4 }
 0x1af   : > { %v2240_v21 = vpop.permute.xlu0 %398  ;;  %v2274_v61 = vpop.permute.xlu2 %923 }
 0x1b0   : > { %v410_v32 = vrot.slane %v2240_v21, 4  ;;  %v414_v36 = vsel %vm411_vm1, %v2240_v21, %v413_v33  ;;  %v947_v4 = vrot.slane %v2274_v61, 4 }
 0x1b1   : > { %v2261_v47 = vperm.slane %v414_v36, %v2246_v28 }
 0x1b2   : > { %v412_v44 = vsel %vm411_vm1, %v410_v32, %v384_v15 }
 0x1b3   : > { %v418_v55 = vperm.slane %v412_v44, %v2246_v28  ;;  %v449_v3 = vrot.slane %v2261_v47, 4 }
 0x1b5   : > { %v437_v7 = vrot.slane %v418_v55, 4 }
 0x1b7   : > { %v927_v37 = vpop.permute.xlu0 %926 }
 0x1b8   : > { %v395_v24 = vpop.permute.xlu1 %394  ;;  %v932_v48 = vrot.slane %v927_v37, 4  ;;  %v936_v49 = vsel %vm411_vm1, %v927_v37, %v935_v40 }
 0x1b9   : > { %v481_v25 = vrot.slane %v395_v24, 4  ;;  %646 = vrot.lane.b32.xlu1 %v395_v24, %s2050_s29  ;;  %v480_v29 = vsel %vm411_vm1, %v479_v26, %v395_v24  ;;  %v2270_v57 = vperm.slane %v936_v49, %v2246_v28 }
 0x1ba   : > { %v486_v38 = vperm.slane %v480_v29, %v2246_v28  ;;  %v934_v62 = vsel %vm411_vm1, %v932_v48, %v921_v17 }
 0x1bb   : > { %v482_v27 = vsel %vm411_vm1, %v2234_v19, %v481_v25  ;;  %v2287_v11 = vperm.slane %v934_v62, %v2246_v28  ;;  %v971_v12 = vrot.slane %v2270_v57, 4 }
 0x1bc   : > { %v490_v34 = vperm.slane %v482_v27, %v2246_v28  ;;  %v491_v51 = vrot.slane %v486_v38, 4 }
 0x1be   : > { %v503_v45 = vrot.slane %v490_v34, 4 }
 0x1c0   : > { %v401_v39 = vpop.permute.xlu1 %400 }
 0x1c1   : > { %v467_v42 = vrot.slane %v401_v39, 4  ;;  %v470_v43 = vsel %vm411_vm1, %v401_v39, %v469_v35  ;;  %650 = vrot.lane.b32.xlu0 %v401_v39, %s2050_s29 }
 0x1c2   : > { %v478_v46 = vperm.slane %v470_v43, %v2246_v28 }
 0x1c3   : > { %v468_v50 = vsel %vm411_vm1, %v467_v42, %v387_v18 }
 0x1c4   : > { %v474_v52 = vperm.slane %v468_v50, %v2246_v28  ;;  %v504_v53 = vsel %vm411_vm1, %v503_v45, %v478_v46  ;;  %v505_v54 = vrot.slane %v478_v46, 4 }
 0x1c5   : > { %v510_v56 = vperm.slane %v504_v53, %v2254_v41 }
 0x1c6   : > { %v492_v58 = vsel %vm411_vm1, %v491_v51, %v474_v52  ;;  %v493_v59 = vrot.slane %v474_v52, 4  ;;  %v506_v60 = vsel %vm411_vm1, %v490_v34, %v505_v54 }
 0x1c7   : > { %v498_v63 = vperm.slane %v492_v58, %v2254_v41  ;;  %v514_v0 = vperm.slane %v506_v60, %v2254_v41  ;;  %v519_v1 = vrot.slane %v510_v56, 4 }
 0x1c8   : > { %v494_v5 = vsel %vm411_vm1, %v486_v38, %v493_v59  ;;  %v2283_v6 = vpop.permute.xlu1 %404 }
 0x1c9   : > { %v502_v8 = vperm.slane %v494_v5, %v2254_v41  ;;  %v515_v9 = vrot.slane %v498_v63, 4  ;;  %v521_v10 = vrot.slane %v514_v0, 4  ;;  %v423_v13 = vrot.slane %v2283_v6, 4 }
 0x1ca   : > { %v426_v14 = vsel %vm411_vm1, %v2283_v6, %v425_v2  ;;  %v520_v16 = vsel %vm411_vm1, 0.0, %v519_v1 }
 0x1cb   : > { %v517_v15 = vrot.slane %v502_v8, 4  ;;  %v522_v17 = vsel %vm411_vm1, 0.0, %v521_v10  ;;  %v588_v18 = vsel %vm411_vm1, %v521_v10, %v510_v56  ;;  %v424_v24 = vsel %vm411_vm1, %v423_v13, %v2236_v20 }
 0x1cc   : > { %v592_v22 = vperm.slane %v588_v18, %v2246_v28  ;;  %v593_v23 = vrot.slane %v522_v17, 4  ;;  %v434_v25 = vperm.slane %v426_v14, %v2246_v28  ;;  %v516_v26 = vsel %vm411_vm1, 0.0, %v515_v9 }
 0x1cd   : > { %v518_v27 = vsel %vm411_vm1, 0.0, %v517_v15  ;;  %v577_v29 = vsel %vm411_vm1, %v517_v15, %v498_v63  ;;  %v430_v30 = vperm.slane %v424_v24, %v2246_v28 }
 0x1ce   : > { %v581_v31 = vperm.slane %v577_v29, %v2246_v28  ;;  %v582_v32 = vrot.slane %v518_v27, 4  ;;  %v594_v33 = vsel %vm411_vm1, %v593_v23, %v520_v16  ;;  %v613_v34 = vrot.slane %v592_v22, 4 }
 0x1cf   : > { %v598_v35 = vperm.slane %v594_v33, %v2246_v28  ;;  %v435_v36 = vrot.slane %v430_v30, 4  ;;  %v438_v20 = vsel %vm411_vm1, %v430_v30, %v437_v7  ;;  %v447_v37 = vrot.slane %v434_v25, 4 }
 0x1d0   : > { %v583_v38 = vsel %vm411_vm1, %v582_v32, %v516_v26  ;;  %v601_v39 = vrot.slane %v581_v31, 4  ;;  %v446_v40 = vperm.slane %v438_v20, %v2254_v41  ;;  %v450_v42 = vsel %vm411_vm1, %v434_v25, %v449_v3  ;;  %v930_v13 = vpop.permute.xlu1 %929 }
 0x1d1   : > { %v587_v43 = vperm.slane %v583_v38, %v2246_v28  ;;  %v611_v44 = vrot.slane %v598_v35, 4  ;;  %v614_v45 = vsel %vm411_vm1, %v598_v35, %v613_v34  ;;  %v436_v46 = vsel %vm411_vm1, %v435_v36, %v418_v55 }
 0x1d2   : > { %v622_v48 = vperm.slane %v614_v45, %v2254_v41  ;;  %v442_v49 = vperm.slane %v436_v46, %v2254_v41  ;;  %v448_v50 = vsel %vm411_vm1, %v447_v37, %v2261_v47  ;;  %v458_v51 = vperm.slane %v450_v42, %v2254_v41 }
 0x1d3   : > { %v599_v52 = vrot.slane %v587_v43, 4  ;;  %v602_v53 = vsel %vm411_vm1, %v587_v43, %v601_v39  ;;  %v612_v54 = vsel %vm411_vm1, %v611_v44, %v592_v22  ;;  %v454_v56 = vperm.slane %v448_v50, %v2254_v41 }
 0x1d4   : > { %v610_v58 = vperm.slane %v602_v53, %v2254_v41  ;;  %v618_v55 = vperm.slane %v612_v54, %v2254_v41  ;;  %v627_v59 = vrot.slane %v622_v48, 4  ;;  %v459_v60 = vrot.slane %v442_v49, 4 }
 0x1d5   : > { %v600_v62 = vsel %vm411_vm1, %v599_v52, %v581_v31  ;;  %v461_v63 = vrot.slane %v446_v40, 4  ;;  %v463_v0 = vrot.slane %v454_v56, 4  ;;  %v465_v47 = vrot.slane %v458_v51, 4 }
 0x1d6   : > { %v606_v1 = vperm.slane %v600_v62, %v2254_v41  ;;  %v623_v2 = vrot.slane %v618_v55, 4  ;;  %v628_v3 = vsel %vm411_vm1, %v627_v59, %v610_v58  ;;  %v629_v5 = vrot.slane %v610_v58, 4 }
 0x1d7   : > { %637 = vst.msk [vmem:[#allocation2 + $0x28] sm:$0xff] %vm631_vm2, %v628_v3  ;;  %v460_v7 = vsel %vm411_vm1, 0.0, %v459_v60  ;;  %v462_v8 = vsel %vm411_vm1, 0.0, %v461_v63  ;;  %v464_v9 = vsel %vm411_vm1, 0.0, %v463_v0  ;;  %v466_v10 = vsel %vm411_vm1, 0.0, %v465_v47 }
 0x1d8   : > { %v624_v14 = vsel %vm411_vm1, %v623_v2, %v606_v1  ;;  %v625_v15 = vrot.slane %v606_v1, 4  ;;  %v630_v16 = vsel %vm411_vm1, %v622_v48, %v629_v5  ;;  %v523_v17 = vsel %vm411_vm1, %v461_v63, %v442_v49 }
 0x1d9   : > { %633 = vst.msk [vmem:[#allocation2 + $0x8] sm:$0xff] %vm631_vm2, %v624_v14  ;;  %v527_v18 = vperm.slane %v523_v17, %v2246_v28  ;;  %v528_v22 = vrot.slane %v462_v8, 4  ;;  %v534_v23 = vsel %vm411_vm1, %v465_v47, %v454_v56  ;;  %v539_v24 = vrot.slane %v466_v10, 4 }
 0x1da   : > { %v626_v25 = vsel %vm411_vm1, %v618_v55, %v625_v15  ;;  %639 = vst.msk [vmem:[#allocation2 + $0x38] sm:$0xff] %vm631_vm2, %v630_v16  ;;  %v538_v26 = vperm.slane %v534_v23, %v2246_v28  ;;  %v945_v27 = vrot.slane %v930_v13, 4  ;;  %v948_v29 = vsel %vm411_vm1, %v930_v13, %v947_v4 }
 0x1db   : > { %635 = vst.msk [vmem:[#allocation2 + $0x18] sm:$0xff] %vm631_vm2, %v626_v25  ;;  %v529_v30 = vsel %vm411_vm1, %v528_v22, %v460_v7  ;;  %v540_v31 = vsel %vm411_vm1, %v539_v24, %v464_v9  ;;  %v547_v32 = vrot.slane %v527_v18, 4  ;;  %v956_v33 = vperm.slane %v948_v29, %v2246_v28 }
 0x1dc   : > { %v533_v34 = vperm.slane %v529_v30, %v2246_v28  ;;  %v544_v35 = vperm.slane %v540_v31, %v2246_v28  ;;  %v559_v36 = vrot.slane %v538_v26, 4  ;;  %v946_v20 = vsel %vm411_vm1, %v945_v27, %v2274_v61 }
 0x1dd   : > { %v959_v37 = vrot.slane %v2287_v11, 4  ;;  %v952_v4 = vperm.slane %v946_v20, %v2246_v28  ;;  %v969_v38 = vrot.slane %v956_v33, 4  ;;  %v972_v39 = vsel %vm411_vm1, %v956_v33, %v971_v12 }
 0x1de   : > { %v545_v40 = vrot.slane %v533_v34, 4  ;;  %v548_v42 = vsel %vm411_vm1, %v533_v34, %v547_v32  ;;  %v557_v43 = vrot.slane %v544_v35, 4  ;;  %v560_v44 = vsel %vm411_vm1, %v544_v35, %v559_v36  ;;  %v1048_v45 = vld [vmem:[#allocation2 + $0x28] sm:$0xff] }
 0x1df   : > { %v556_v46 = vperm.slane %v548_v42, %v2254_v41  ;;  %v568_v61 = vperm.slane %v560_v44, %v2254_v41  ;;  %v957_v48 = vrot.slane %v952_v4, 4  ;;  %v960_v49 = vsel %vm411_vm1, %v952_v4, %v959_v37  ;;  %1688 = vmatpush.xpose.msk.msrb.mxu1 %vm631_vm2, %v1048_v45 }
 0x1e0   : > { %v546_v50 = vsel %vm411_vm1, %v545_v40, %v527_v18  ;;  %v558_v12 = vsel %vm411_vm1, %v557_v43, %v538_v26  ;;  %v968_v51 = vperm.slane %v960_v49, %v2254_v41  ;;  %v970_v52 = vsel %vm411_vm1, %v969_v38, %v2270_v57  ;;  %v1044_v53 = vld [vmem:[#allocation2 + $0x8] sm:$0xff] }
 0x1e1   : > { %v552_v54 = vperm.slane %v546_v50, %v2254_v41  ;;  %v564_v56 = vperm.slane %v558_v12, %v2254_v41  ;;  %v573_v58 = vrot.slane %v568_v61, 4  ;;  %v575_v55 = vrot.slane %v556_v46, 4  ;;  %1682 = vmatpush.xpose.msk.msra.mxu2 %vm631_vm2, %v1044_v53  ;;  %v1050_v38 = vld [vmem:[#allocation2 + $0x38] sm:$0xff] }
 0x1e2   : > { %v958_v59 = vsel %vm411_vm1, %v957_v48, %v2287_v11  ;;  %v976_v60 = vperm.slane %v970_v52, %v2254_v41  ;;  %v980_v62 = vperm.slane %v972_v39, %v2254_v41  ;;  %v983_v63 = vrot.slane %v968_v51, 4  ;;  %v1046_v0 = vld [vmem:[#allocation2 + $0x18] sm:$0xff] }
 0x1e3   : > { %v569_v47 = vrot.slane %v564_v56, 4  ;;  %v571_v57 = vrot.slane %v552_v54, 4  ;;  %v574_v1 = vsel %vm411_vm1, %v573_v58, %v556_v46  ;;  %v576_v2 = vsel %vm411_vm1, %v568_v61, %v575_v55  ;;  %1685 = vmatpush.xpose.msk.msra.mxu3 %vm631_vm2, %v1046_v0 }
 0x1e4   : > { %636 = vst.msk [vmem:[#allocation2 + $0x20] sm:$0xff] %vm631_vm2, %v574_v1  ;;  %v964_v3 = vperm.slane %v958_v59, %v2254_v41  ;;  %v984_v11 = vsel %vm411_vm1, 0.0, %v983_v63  ;;  %v985_v5 = vrot.slane %v976_v60, 4  ;;  %v987_v7 = vrot.slane %v980_v62, 4 }
 0x1e5   : > { %v570_v8 = vsel %vm411_vm1, %v569_v47, %v552_v54  ;;  %v572_v9 = vsel %vm411_vm1, %v564_v56, %v571_v57  ;;  %638 = vst.msk [vmem:[#allocation2 + $0x30] sm:$0xff] %vm631_vm2, %v576_v2  ;;  %v994_v10 = vrot.slane %v984_v11, 4  ;;  %v641_v47 = vpop.permute.xlu0 %640 }
 0x1e6   : > { %632 = vst.msk [vmem:[#allocation2] sm:$0xff] %vm631_vm2, %v570_v8  ;;  %v981_v13 = vrot.slane %v964_v3, 4  ;;  %v986_v14 = vsel %vm411_vm1, 0.0, %v985_v5  ;;  %v988_v15 = vsel %vm411_vm1, 0.0, %v987_v7  ;;  %v1000_v16 = vsel %vm411_vm1, %v987_v7, %v976_v60 }
 0x1e7   : > { %634 = vst.msk [vmem:[#allocation2 + $0x10] sm:$0xff] %vm631_vm2, %v572_v9  ;;  %v1004_v17 = vperm.slane %v1000_v16, %v2246_v28  ;;  %v1005_v18 = vrot.slane %v988_v15, 4  ;;  %v989_v22 = vsel %vm411_vm1, %v983_v63, %v964_v3  ;;  %v643_v63 = vpop.permute.xlu2 %642 }
 0x1e8   : > { %v982_v23 = vsel %vm411_vm1, 0.0, %v981_v13  ;;  %v993_v24 = vperm.slane %v989_v22, %v2246_v28 }
 0x1e9   : > { %v1006_v25 = vsel %vm411_vm1, %v1005_v18, %v986_v14  ;;  %v995_v26 = vsel %vm411_vm1, %v994_v10, %v982_v23  ;;  %v1025_v27 = vrot.slane %v1004_v17, 4  ;;  %v666_v18 = vrot.slane %v641_v47, 4 }
 0x1ea   : > { %v999_v29 = vperm.slane %v995_v26, %v2246_v28  ;;  %v1010_v30 = vperm.slane %v1006_v25, %v2246_v28  ;;  %v1013_v31 = vrot.slane %v993_v24, 4 }
 0x1eb   : > { %v1047_v32 = vld [vmem:[#allocation2 + $0x20] sm:$0xff] }
 0x1ec   : > { %1689 = vmatpush.xpose.msk.msrb.mxu1 %vm631_vm2, %v1047_v32  ;;  %v1014_v33 = vsel %vm411_vm1, %v999_v29, %v1013_v31  ;;  %v1026_v34 = vsel %vm411_vm1, %v1010_v30, %v1025_v27  ;;  %v1011_v35 = vrot.slane %v999_v29, 4  ;;  %v1023_v36 = vrot.slane %v1010_v30, 4  ;;  %v1049_v49 = vld [vmem:[#allocation2 + $0x30] sm:$0xff] }
 0x1ed   : > { %v1043_v20 = vld [vmem:[#allocation2] sm:$0xff]  ;;  %v1022_v37 = vperm.slane %v1014_v33, %v2254_v41  ;;  %v1034_v4 = vperm.slane %v1026_v34, %v2254_v41 }
 0x1ee   : > { %1683 = vmatpush.xpose.msk.msra.mxu2 %vm631_vm2, %v1043_v20  ;;  %v1045_v39 = vld [vmem:[#allocation2 + $0x10] sm:$0xff]  ;;  %v1012_v40 = vsel %vm411_vm1, %v1011_v35, %v993_v24  ;;  %v1024_v42 = vsel %vm411_vm1, %v1023_v36, %v1004_v17 }
 0x1ef   : > { %v1039_v43 = vrot.slane %v1034_v4, 4  ;;  %1686 = vmatpush.xpose.msk.msra.mxu3 %vm631_vm2, %v1045_v39  ;;  %v1018_v44 = vperm.slane %v1012_v40, %v2254_v41  ;;  %v1030_v45 = vperm.slane %v1024_v42, %v2254_v41  ;;  %v1041_v51 = vrot.slane %v1022_v37, 4 }
 0x1f0   : > { %v722_v39 = vrot.slane %v643_v63, 4 }
 0x1f1   : > { %v1040_v46 = vsel %vm411_vm1, %v1039_v43, %v1022_v37  ;;  %v1035_v61 = vrot.slane %v1030_v45, 4  ;;  %v1037_v48 = vrot.slane %v1018_v44, 4  ;;  %v1042_v52 = vsel %vm411_vm1, %v1034_v4, %v1041_v51 }
 0x1f2   : > { %1691 = vmatpush.xpose.msk.msrb.mxu2 %vm631_vm2, %v1050_v38  ;;  %1690 = vmatmul.msk.f32.vlgmr.msrb.gmra.mxu1 %vm631_vm2, %v1040_v46 }
 0x1f3   : > { %v1036_v50 = vsel %vm411_vm1, %v1035_v61, %v1018_v44  ;;  %v1038_v12 = vsel %vm411_vm1, %v1030_v45, %v1037_v48 }
 0x1f4   : > { %1684 = vmatmul.msk.f32.vlgmr.msra.gmra.mxu2 %vm631_vm2, %v1036_v50  ;;  %1687 = vmatmul.msk.f32.vlgmr.msra.gmra.mxu3 %vm631_vm2, %v1038_v12 }
 0x1f6   : > { %1692 = vmatpush.xpose.msk.msrb.mxu2 %vm631_vm2, %v1049_v49 }
 0x1fc   : > { %1693 = vmatmul.msk.f32.vlgmr.msrb.gmra.mxu2 %vm631_vm2, %v1042_v52 }
 0x202   : > { %v645_v57 = vpop.permute.xlu2 %644 }
 0x203   : > { %v678_v22 = vrot.slane %v645_v57, 4 }
 0x22b   : > { %v2428_v0 = vpop.permute.xlu1 %646 }
 0x233   : > { %v651_v11 = vpop.permute.xlu0 %650 }
 0x234   : > { %v720_v33 = vrot.slane %v651_v11, 4  ;;  %v723_v48 = vsel %vm411_vm1, %v651_v11, %v722_v39 }
 0x236   : > { %v721_v61 = vsel %vm411_vm1, %v720_v33, %v643_v63 }
 0x26f   : > { %v1144_v53 = vpop.f32.mrf.mxu1 }
 0x270   : > { %v1183_v54 = vsel %vm1176_vm3, %v1144_v53, -inf }
 0x271   : > { %1184 = vmax.xlane.f32.xlu1 %v1183_v54 }
 0x277   : > { %v1086_v56 = vpop.f32.mrf.mxu2  ;;  %v1115_v55 = vpop.f32.mrf.mxu3 }
 0x278   : > { %v1177_v58 = vsel %vm1176_vm3, %v1086_v56, -inf  ;;  %v1180_v60 = vsel %vm1176_vm3, %v1115_v55, -inf }
 0x279   : > { %1178 = vmax.xlane.f32.xlu2 %v1177_v58  ;;  %v734_v58 = vrot.slane %v2428_v0, 4 }
 0x27f   : > { %v1173_v59 = vpop.f32.mrf.mxu2 }
 0x280   : > { %v1186_v62 = vsel %vm1176_vm3, %v1173_v59, -inf }
 0x281   : > { %1181 = vmax.xlane.f32.xlu2 %v1180_v60  ;;  %1187 = vmax.xlane.f32.xlu0 %v1186_v62 }
 0x28a   : > { %648 = vrot.lane.b32.xlu1 %v2240_v21, %s2050_s29 }
 0x295   : > { %654 = vrot.lane.b32.xlu0 %v2234_v19, %s2050_s29 }
 0x299   : > { %652 = vrot.lane.b32.xlu2 %v2283_v6, %s2050_s29 }
 0x2e4   : > { %v1185_v1 = vpop.xlane.xlu1 %1184 }
 0x2e5   : > { %v1191_v2 = vsub.f32 %v1144_v53, %v1185_v1 }
 0x2e7   : > { %v1197_v3 = vmul.f32 1.442695, %v1191_v2 }
 0x2e9   : > { %1814 = vpow2.f32 %v1197_v3 }
 0x2ec   : > { %v1179_v5 = vpop.xlane.xlu2 %1178 }
 0x2ed   : > { %v1189_v7 = vsub.f32 %v1086_v56, %v1179_v5 }
 0x2ef   : > { %v2430_v8 = vpop.eup %1814  ;;  %v1193_v21 = vmul.f32 1.442695, %v1189_v7 }
 0x2f0   : > { %v1207_v19 = vsel %vm1176_vm3, %v2430_v8, 0.0 }
 0x2f1   : > { %1816 = vpow2.f32 %v1193_v21  ;;  %1208 = vadd.xlane.f32.xlu2 %v1207_v19 }
 0x2f4   : > { %v1182_v6 = vpop.xlane.xlu2 %1181  ;;  %v1188_v9 = vpop.xlane.xlu0 %1187 }
 0x2f5   : > { %v1190_v10 = vsub.f32 %v1115_v55, %v1182_v6  ;;  %v1192_v13 = vsub.f32 %v1173_v59, %v1188_v9  ;;  %v727_v55 = vperm.slane %v721_v61, %v2246_v28  ;;  %v731_v59 = vperm.slane %v723_v48, %v2246_v28 }
 0x2f7   : > { %v2434_v14 = vpop.eup %1816  ;;  %v1195_v15 = vmul.f32 1.442695, %v1190_v10  ;;  %v1199_v16 = vmul.f32 1.442695, %v1192_v13 }
 0x2f8   : > { %v1201_v17 = vsel %vm1176_vm3, %v2434_v14, 0.0 }
 0x2f9   : > { %1818 = vpow2.f32 %v1195_v15  ;;  %1202 = vadd.xlane.f32.xlu1 %v1201_v17 }
 0x2fa   : > { %1820 = vpow2.f32 %v1199_v16 }
 0x2fc   : > { %v649_v23 = vpop.permute.xlu1 %648  ;;  %v653_v24 = vpop.permute.xlu2 %652 }
 0x2fd   : > { %v664_v25 = vrot.slane %v649_v23, 4  ;;  %v667_v26 = vsel %vm411_vm1, %v649_v23, %v666_v18  ;;  %v676_v27 = vrot.slane %v653_v24, 4  ;;  %v679_v29 = vsel %vm411_vm1, %v653_v24, %v678_v22 }
 0x2fe   : > { %v675_v30 = vperm.slane %v667_v26, %v2246_v28  ;;  %v687_v31 = vperm.slane %v679_v29, %v2246_v28  ;;  %v746_v22 = vrot.slane %v727_v55, 4  ;;  %v758_v23 = vrot.slane %v731_v59, 4 }
 0x2ff   : > { %v2442_v32 = vpop.eup %1818  ;;  %v665_v34 = vsel %vm411_vm1, %v664_v25, %v641_v47  ;;  %v677_v35 = vsel %vm411_vm1, %v676_v27, %v645_v57 }
 0x300   : > { %v2446_v36 = vpop.eup %1820  ;;  %v671_v20 = vperm.slane %v665_v34, %v2246_v28  ;;  %v702_v37 = vrot.slane %v675_v30, 4  ;;  %v683_v4 = vperm.slane %v677_v35, %v2246_v28  ;;  %v700_v38 = vrot.slane %v687_v31, 4 }
 0x301   : > { %v1204_v40 = vsel %vm1176_vm3, %v2442_v32, 0.0  ;;  %v1210_v42 = vsel %vm1176_vm3, %v2446_v36, 0.0 }
 0x302   : > { %v690_v43 = vrot.slane %v671_v20, 4  ;;  %v688_v44 = vrot.slane %v683_v4, 4  ;;  %v701_v45 = vsel %vm411_vm1, %v700_v38, %v675_v30  ;;  %v703_v46 = vsel %vm411_vm1, %v687_v31, %v702_v37  ;;  %1205 = vadd.xlane.f32.xlu1 %v1204_v40  ;;  %1211 = vadd.xlane.f32.xlu0 %v1210_v42 }
 0x303   : > { %v707_v49 = vperm.slane %v701_v45, %v2254_v41  ;;  %v711_v50 = vperm.slane %v703_v46, %v2254_v41 }
 0x304   : > { %v689_v12 = vsel %vm411_vm1, %v688_v44, %v671_v20  ;;  %v691_v51 = vsel %vm411_vm1, %v683_v4, %v690_v43 }
 0x305   : > { %v695_v52 = vperm.slane %v689_v12, %v2254_v41  ;;  %v699_v53 = vperm.slane %v691_v51, %v2254_v41  ;;  %v716_v54 = vrot.slane %v707_v49, 4  ;;  %v718_v56 = vrot.slane %v711_v50, 4 }
 0x307   : > { %v712_v60 = vrot.slane %v695_v52, 4  ;;  %v714_v62 = vrot.slane %v699_v53, 4  ;;  %v717_v63 = vsel %vm411_vm1, 0.0, %v716_v54  ;;  %v719_v47 = vsel %vm411_vm1, 0.0, %v718_v56  ;;  %v655_v57 = vpop.permute.xlu0 %654 }
 0x308   : > { %v787_v1 = vsel %vm411_vm1, %v718_v56, %v707_v49  ;;  %v792_v2 = vrot.slane %v719_v47, 4  ;;  %v732_v3 = vrot.slane %v655_v57, 4  ;;  %v735_v11 = vsel %vm411_vm1, %v655_v57, %v734_v58 }
 0x309   : > { %v713_v5 = vsel %vm411_vm1, 0.0, %v712_v60  ;;  %v715_v7 = vsel %vm411_vm1, 0.0, %v714_v62  ;;  %v776_v21 = vsel %vm411_vm1, %v714_v62, %v695_v52  ;;  %v791_v19 = vperm.slane %v787_v1, %v2246_v28 }
 0x30a   : > { %v780_v6 = vperm.slane %v776_v21, %v2246_v28  ;;  %v781_v9 = vrot.slane %v715_v7, 4  ;;  %v793_v10 = vsel %vm411_vm1, %v792_v2, %v717_v63  ;;  %v733_v13 = vsel %vm411_vm1, %v732_v3, %v2428_v0 }
 0x30b   : > { %v797_v15 = vperm.slane %v793_v10, %v2246_v28  ;;  %v812_v16 = vrot.slane %v791_v19, 4  ;;  %v739_v17 = vperm.slane %v733_v13, %v2246_v28  ;;  %v743_v18 = vperm.slane %v735_v11, %v2246_v28 }
 0x30c   : > { %v782_v24 = vsel %vm411_vm1, %v781_v9, %v713_v5  ;;  %v800_v25 = vrot.slane %v780_v6, 4 }
 0x30d   : > { %v786_v26 = vperm.slane %v782_v24, %v2246_v28  ;;  %v810_v27 = vrot.slane %v797_v15, 4  ;;  %v813_v29 = vsel %vm411_vm1, %v797_v15, %v812_v16  ;;  %v744_v30 = vrot.slane %v739_v17, 4 }
 0x30e   : > { %v821_v0 = vperm.slane %v813_v29, %v2254_v41  ;;  %v747_v31 = vsel %vm411_vm1, %v739_v17, %v746_v22  ;;  %v756_v33 = vrot.slane %v743_v18, 4  ;;  %v759_v34 = vsel %vm411_vm1, %v743_v18, %v758_v23 }
 0x30f   : > { %v798_v35 = vrot.slane %v786_v26, 4  ;;  %v801_v20 = vsel %vm411_vm1, %v786_v26, %v800_v25  ;;  %v811_v37 = vsel %vm411_vm1, %v810_v27, %v791_v19  ;;  %v745_v4 = vsel %vm411_vm1, %v744_v30, %v727_v55 }
 0x310   : > { %v809_v38 = vperm.slane %v801_v20, %v2254_v41  ;;  %v817_v39 = vperm.slane %v811_v37, %v2254_v41  ;;  %v826_v40 = vrot.slane %v821_v0, 4  ;;  %v751_v42 = vperm.slane %v745_v4, %v2254_v41 }
 0x311   : > { %v799_v43 = vsel %vm411_vm1, %v798_v35, %v780_v6  ;;  %v755_v44 = vperm.slane %v747_v31, %v2254_v41  ;;  %v757_v45 = vsel %vm411_vm1, %v756_v33, %v731_v59  ;;  %v767_v46 = vperm.slane %v759_v34, %v2254_v41 }
 0x312   : > { %v805_v61 = vperm.slane %v799_v43, %v2254_v41  ;;  %v822_v48 = vrot.slane %v817_v39, 4  ;;  %v827_v49 = vsel %vm411_vm1, %v826_v40, %v809_v38  ;;  %v828_v50 = vrot.slane %v809_v38, 4 }
 0x313   : > { %888 = vst.msk [vmem:[#allocation3 + $0x20] sm:$0xff] %vm631_vm2, %v827_v49  ;;  %v763_v12 = vperm.slane %v757_v45, %v2254_v41  ;;  %v768_v51 = vrot.slane %v751_v42, 4  ;;  %v770_v52 = vrot.slane %v755_v44, 4  ;;  %v774_v53 = vrot.slane %v767_v46, 4 }
 0x314   : > { %v823_v54 = vsel %vm411_vm1, %v822_v48, %v805_v61  ;;  %v824_v56 = vrot.slane %v805_v61, 4  ;;  %v829_v58 = vsel %vm411_vm1, %v821_v0, %v828_v50 }
 0x315   : > { %884 = vst.msk [vmem:[#allocation3] sm:$0xff] %vm631_vm2, %v823_v54  ;;  %v769_v55 = vsel %vm411_vm1, 0.0, %v768_v51  ;;  %v771_v59 = vsel %vm411_vm1, 0.0, %v770_v52  ;;  %v772_v60 = vrot.slane %v763_v12, 4  ;;  %v775_v62 = vsel %vm411_vm1, 0.0, %v774_v53 }
 0x316   : > { %v825_v63 = vsel %vm411_vm1, %v817_v39, %v824_v56  ;;  %890 = vst.msk [vmem:[#allocation3 + $0x30] sm:$0xff] %vm631_vm2, %v829_v58  ;;  %v830_v47 = vsel %vm411_vm1, %v770_v52, %v751_v42  ;;  %v835_v57 = vrot.slane %v771_v59, 4  ;;  %v841_v1 = vsel %vm411_vm1, %v774_v53, %v763_v12 }
 0x317   : > { %886 = vst.msk [vmem:[#allocation3 + $0x10] sm:$0xff] %vm631_vm2, %v825_v63  ;;  %v773_v2 = vsel %vm411_vm1, 0.0, %v772_v60  ;;  %v834_v3 = vperm.slane %v830_v47, %v2246_v28  ;;  %v845_v11 = vperm.slane %v841_v1, %v2246_v28  ;;  %v846_v5 = vrot.slane %v775_v62, 4 }
 0x318   : > { %v836_v7 = vsel %vm411_vm1, %v835_v57, %v769_v55 }
 0x319   : > { %v840_v21 = vperm.slane %v836_v7, %v2246_v28  ;;  %v847_v19 = vsel %vm411_vm1, %v846_v5, %v773_v2  ;;  %v854_v6 = vrot.slane %v834_v3, 4  ;;  %v866_v9 = vrot.slane %v845_v11, 4 }
 0x31a   : > { %v851_v10 = vperm.slane %v847_v19, %v2246_v28  ;;  %v1055_v40 = vld [vmem:[#allocation3 + $0x20] sm:$0xff] }
 0x31b   : > { %v852_v13 = vrot.slane %v840_v21, 4  ;;  %v855_v15 = vsel %vm411_vm1, %v840_v21, %v854_v6 }
 0x31c   : > { %v863_v16 = vperm.slane %v855_v15, %v2254_v41  ;;  %v864_v17 = vrot.slane %v851_v10, 4  ;;  %v867_v18 = vsel %vm411_vm1, %v851_v10, %v866_v9  ;;  %v1051_v43 = vld [vmem:[#allocation3] sm:$0xff] }
 0x31d   : > { %v853_v22 = vsel %vm411_vm1, %v852_v13, %v834_v3  ;;  %v875_v23 = vperm.slane %v867_v18, %v2254_v41  ;;  %v1057_v38 = vld [vmem:[#allocation3 + $0x30] sm:$0xff] }
 0x31e   : > { %v859_v24 = vperm.slane %v853_v22, %v2254_v41  ;;  %v865_v25 = vsel %vm411_vm1, %v864_v17, %v845_v11  ;;  %v882_v26 = vrot.slane %v863_v16, 4  ;;  %v1053_v42 = vld [vmem:[#allocation3 + $0x10] sm:$0xff] }
 0x31f   : > { %v871_v27 = vperm.slane %v865_v25, %v2254_v41  ;;  %v880_v29 = vrot.slane %v875_v23, 4 }
 0x320   : > { %v878_v30 = vrot.slane %v859_v24, 4  ;;  %v883_v0 = vsel %vm411_vm1, %v875_v23, %v882_v26 }
 0x321   : > { %v876_v31 = vrot.slane %v871_v27, 4  ;;  %v881_v33 = vsel %vm411_vm1, %v880_v29, %v863_v16  ;;  %891 = vst.msk [vmem:[#allocation3 + $0x38] sm:$0xff] %vm631_vm2, %v883_v0 }
 0x322   : > { %v879_v34 = vsel %vm411_vm1, %v871_v27, %v878_v30  ;;  %889 = vst.msk [vmem:[#allocation3 + $0x28] sm:$0xff] %vm631_vm2, %v881_v33 }
 0x323   : > { %v877_v35 = vsel %vm411_vm1, %v876_v31, %v859_v24  ;;  %887 = vst.msk [vmem:[#allocation3 + $0x18] sm:$0xff] %vm631_vm2, %v879_v34 }
 0x324   : > { %885 = vst.msk [vmem:[#allocation3 + $0x8] sm:$0xff] %vm631_vm2, %v877_v35 }
 0x328   : > { %v1058_v20 = vld [vmem:[#allocation3 + $0x38] sm:$0xff] }
 0x329   : > { %v1056_v37 = vld [vmem:[#allocation3 + $0x28] sm:$0xff]  ;;  %1359 = vmatpush.msra.mxu2 %v1058_v20 }
 0x32a   : > { %1336 = vmatpush.msra.mxu1 %v1056_v37  ;;  %v1054_v4 = vld [vmem:[#allocation3 + $0x18] sm:$0xff] }
 0x32b   : > { %v1052_v39 = vld [vmem:[#allocation3 + $0x8] sm:$0xff]  ;;  %1313 = vmatpush.msrb.mxu0 %v1054_v4  ;;  %1360 = vmatpush.msra.mxu2 %v1057_v38 }
 0x32c   : > { %1290 = vmatpush.msrb.mxu3 %v1052_v39  ;;  %1337 = vmatpush.msra.mxu1 %v1055_v40 }
 0x32d   : > { %1314 = vmatpush.msrb.mxu0 %v1053_v42 }
 0x32e   : > { %1291 = vmatpush.msrb.mxu3 %v1051_v43 }
 0x364   : > { %v1209_v44 = vpop.xlane.xlu2 %1208 }
 0x365   : > { %1822 = vrcp.f32 %v1209_v44  ;;  %v1254_v49 = vand.u32 2147483648, %v1209_v44  ;;  %v1252_v12 = vand.u32 2147483647, %v1209_v44  ;;  %vm1248_vm5 = vweird.f32 %v1209_v44 }
 0x367   : > { %v1255_v53 = vor.u32 1.1754944e-38, %v1254_v49  ;;  %vm1253_vm7 = vcmp.eq.f32.partialorder %v1252_v12, 8.507059e+37 }
 0x36b   : > { %v1823_v45 = vpop.eup %1822 }
 0x36c   : > { %v1244_v46 = vmul.f32 %v1823_v45, %v1209_v44  ;;  %v1203_v61 = vpop.xlane.xlu1 %1202  ;;  %vm1249_vm4 = vweird.f32 %v1823_v45 }
 0x36d   : > { %1824 = vrcp.f32 %v1203_v61  ;;  %vm1250_vm6 = vmor %vm1248_vm5, %vm1249_vm4  ;;  %v1224_v62 = vand.u32 2147483648, %v1203_v61  ;;  %v1222_v47 = vand.u32 2147483647, %v1203_v61  ;;  %vm1218_vm9 = vweird.f32 %v1203_v61 }
 0x36e   : > { %v1245_v48 = vsub.f32 1.0, %v1244_v46 }
 0x36f   : > { %v1225_v2 = vor.u32 1.1754944e-38, %v1224_v62  ;;  %vm1223_vm11 = vcmp.eq.f32.partialorder %v1222_v47, 8.507059e+37 }
 0x370   : > { %v1246_v50 = vmul.f32 %v1823_v45, %v1245_v48 }
 0x372   : > { %v1247_v51 = vadd.f32 %v1823_v45, %v1246_v50 }
 0x373   : > { %v1825_v52 = vpop.eup %1824 }
 0x374   : > { %v1251_v54 = vsel %vm1250_vm6, %v1823_v45, %v1247_v51  ;;  %v1214_v56 = vmul.f32 %v1825_v52, %v1203_v61  ;;  %vm1219_vm8 = vweird.f32 %v1825_v52 }
 0x375   : > { %v1256_v58 = vsel %vm1253_vm7, %v1255_v53, %v1251_v54  ;;  %v1206_v55 = vpop.xlane.xlu1 %1205  ;;  %v1212_v59 = vpop.xlane.xlu0 %1211  ;;  %vm1220_vm10 = vmor %vm1218_vm9, %vm1219_vm8  ;;  %vm1489_vm8 = vcmask 195584  }
 0x376   : > { %v1215_v60 = vsub.f32 1.0, %v1214_v56  ;;  %1826 = vrcp.f32 %v1206_v55  ;;  %v1257_v57 = vmul.f32 %v2430_v8, %v1256_v58  ;;  %v1239_v10 = vand.u32 2147483648, %v1206_v55 }
 0x377   : > { %1828 = vrcp.f32 %v1212_v59  ;;  %v1237_v15 = vand.u32 2147483647, %v1206_v55  ;;  %v1269_v16 = vand.u32 2147483648, %v1212_v59  ;;  %v1267_v18 = vand.u32 2147483647, %v1212_v59 }
 0x378   : > { %v1216_v63 = vmul.f32 %v1825_v52, %v1215_v60  ;;  %1696 = vmatmul.msk.f32.vlgmr.msra.gmra.mxu1 %vm1176_vm3, %v1257_v57  ;;  %vm1233_vm14 = vweird.f32 %v1206_v55  ;;  %v1240_v23 = vor.u32 1.1754944e-38, %v1239_v10  ;;  %vm1263_vm4 = vweird.f32 %v1212_v59 }
 0x379   : > { %vm1238_vm5 = vcmp.eq.f32.partialorder %v1237_v15, 8.507059e+37  ;;  %vm1268_vm7 = vcmp.eq.f32.partialorder %v1267_v18, 8.507059e+37 }
 0x37a   : > { %v1217_v1 = vadd.f32 %v1825_v52, %v1216_v63 }
 0x37c   : > { %v1827_v3 = vpop.eup %1826  ;;  %v1221_v11 = vsel %vm1220_vm10, %v1825_v52, %v1217_v1 }
 0x37d   : > { %v1829_v5 = vpop.eup %1828  ;;  %v1229_v7 = vmul.f32 %v1827_v3, %v1206_v55  ;;  %v1226_v21 = vsel %vm1223_vm11, %v1225_v2, %v1221_v11  ;;  %vm1234_vm12 = vweird.f32 %v1827_v3 }
 0x37e   : > { %v1259_v19 = vmul.f32 %v1829_v5, %v1212_v59  ;;  %v1227_v6 = vmul.f32 %v2434_v14, %v1226_v21  ;;  %vm1264_vm13 = vweird.f32 %v1829_v5  ;;  %vm1235_vm15 = vmor %vm1233_vm14, %vm1234_vm12  ;;  %v1270_v14 = vor.u32 1.1754944e-38, %v1269_v16 }
 0x37f   : > { %v1230_v9 = vsub.f32 1.0, %v1229_v7  ;;  %vm1265_vm6 = vmor %vm1263_vm4, %vm1264_vm13 }
 0x380   : > { %v1260_v13 = vsub.f32 1.0, %v1259_v19  ;;  %1694 = vmatmul.msk.f32.vlgmr.msrb.gmra.mxu3 %vm1176_vm3, %v1227_v6 }
 0x381   : > { %v1231_v8 = vmul.f32 %v1827_v3, %v1230_v9 }
 0x382   : > { %v1261_v17 = vmul.f32 %v1829_v5, %v1260_v13 }
 0x383   : > { %v1232_v22 = vadd.f32 %v1827_v3, %v1231_v8 }
 0x384   : > { %v1262_v24 = vadd.f32 %v1829_v5, %v1261_v17 }
 0x385   : > { %v1236_v25 = vsel %vm1235_vm15, %v1827_v3, %v1232_v22 }
 0x386   : > { %v1266_v26 = vsel %vm1265_vm6, %v1829_v5, %v1262_v24  ;;  %v1241_v27 = vsel %vm1238_vm5, %v1240_v23, %v1236_v25 }
 0x387   : > { %v1271_v29 = vsel %vm1268_vm7, %v1270_v14, %v1266_v26  ;;  %v1242_v30 = vmul.f32 %v2442_v32, %v1241_v27 }
 0x388   : > { %v1272_v0 = vmul.f32 %v2446_v36, %v1271_v29 }
 0x389   : > { %1695 = vmatmul.msk.f32.vlgmr.msrb.gmra.mxu0 %vm1176_vm3, %v1242_v30 }
 0x38a   : > { %1697 = vmatmul.msk.f32.vlgmr.msra.gmra.mxu2 %vm1176_vm3, %v1272_v0 }
 0x3f5   : > { %v1339_v34 = vpop.f32.mrf.mxu1 }
 0x3f6   : > { %v1365_v35 = vrot.slane %v1339_v34, 4 }
 0x403   : > { %v1293_v31 = vpop.f32.mrf.mxu3 }
 0x404   : > { %v1367_v33 = vrot.slane %v1293_v31, 4  ;;  %v1366_v4 = vsel %vm411_vm1, %v1365_v35, %v1293_v31  ;;  %v1494_v35 = vld [vmem:[#allocation10 + $0x18] sm:$0xff] }
 0x405   : > { %v1372_v32 = vperm.slane %v1366_v4, %v2246_v28  ;;  %1514 = vmatpush.msra.mxu3 %v1494_v35 }
 0x406   : > { %v1368_v20 = vsel %vm411_vm1, %v1339_v34, %v1367_v33  ;;  %v1316_v37 = vpop.f32.mrf.mxu0 }
 0x407   : > { %v1376_v38 = vperm.slane %v1368_v20, %v2246_v28  ;;  %v1379_v39 = vrot.slane %v1316_v37, 4  ;;  %v1391_v46 = vrot.slane %v1372_v32, 4  ;;  %v1493_v20 = vld [vmem:[#allocation10 + $0x10] sm:$0xff] }
 0x408   : > { %1515 = vmatpush.msra.mxu3 %v1493_v20 }
 0x409   : > { %v1403_v43 = vrot.slane %v1376_v38, 4 }
 0x40d   : > { %v1362_v40 = vpop.f32.mrf.mxu2 }
 0x40e   : > { %v1377_v36 = vrot.slane %v1362_v40, 4  ;;  %v1380_v42 = vsel %vm411_vm1, %v1362_v40, %v1379_v39 }
 0x40f   : > { %v1388_v44 = vperm.slane %v1380_v42, %v2246_v28  ;;  %v1813_v42 = vld [vmem:[%s2635_s4] ss:$0 sm:$0xff] }
 0x410   : > { %v1378_v45 = vsel %vm411_vm1, %v1377_v36, %v1316_v37  ;;  %v1491_v37 = vld [vmem:[#allocation10] sm:$0xff] }
 0x411   : > { %v1384_v61 = vperm.slane %v1378_v45, %v2246_v28  ;;  %v1401_v48 = vrot.slane %v1388_v44, 4  ;;  %v1404_v49 = vsel %vm411_vm1, %v1388_v44, %v1403_v43 }
 0x412   : > { %v1412_v50 = vperm.slane %v1404_v49, %v2254_v41 }
 0x413   : > { %v1389_v12 = vrot.slane %v1384_v61, 4  ;;  %v1392_v51 = vsel %vm411_vm1, %v1384_v61, %v1391_v46  ;;  %v1402_v52 = vsel %vm411_vm1, %v1401_v48, %v1376_v38 }
 0x414   : > { %v1400_v53 = vperm.slane %v1392_v51, %v2254_v41  ;;  %v1408_v54 = vperm.slane %v1402_v52, %v2254_v41  ;;  %v1419_v56 = vrot.slane %v1412_v50, 4 }
 0x415   : > { %v1390_v58 = vsel %vm411_vm1, %v1389_v12, %v1372_v32 }
 0x416   : > { %v1396_v55 = vperm.slane %v1390_v58, %v2254_v41  ;;  %v1415_v59 = vrot.slane %v1400_v53, 4  ;;  %v1417_v60 = vrot.slane %v1408_v54, 4  ;;  %v1420_v62 = vsel %vm411_vm1, 0.0, %v1419_v56 }
 0x417   : > { %v1432_v63 = vsel %vm411_vm1, %v1419_v56, %v1408_v54  ;;  %v1437_v47 = vrot.slane %v1420_v62, 4 }
 0x418   : > { %v1413_v57 = vrot.slane %v1396_v55, 4  ;;  %v1416_v1 = vsel %vm411_vm1, 0.0, %v1415_v59  ;;  %v1418_v2 = vsel %vm411_vm1, 0.0, %v1417_v60  ;;  %v1436_v3 = vperm.slane %v1432_v63, %v2246_v28 }
 0x419   : > { %v1426_v11 = vrot.slane %v1416_v1, 4  ;;  %v1421_v5 = vsel %vm411_vm1, %v1415_v59, %v1396_v55  ;;  %v1438_v7 = vsel %vm411_vm1, %v1437_v47, %v1418_v2 }
 0x41a   : > { %v1414_v21 = vsel %vm411_vm1, 0.0, %v1413_v57  ;;  %v1425_v19 = vperm.slane %v1421_v5, %v2246_v28  ;;  %v1442_v6 = vperm.slane %v1438_v7, %v2246_v28  ;;  %v1457_v9 = vrot.slane %v1436_v3, 4 }
 0x41b   : > { %v1427_v10 = vsel %vm411_vm1, %v1426_v11, %v1414_v21 }
 0x41c   : > { %v1431_v13 = vperm.slane %v1427_v10, %v2246_v28  ;;  %v1445_v8 = vrot.slane %v1425_v19, 4  ;;  %v1458_v15 = vsel %vm411_vm1, %v1442_v6, %v1457_v9  ;;  %v1455_v16 = vrot.slane %v1442_v6, 4 }
 0x41d   : > { %v1466_v17 = vperm.slane %v1458_v15, %v2254_v41 }
 0x41e   : > { %v1446_v18 = vsel %vm411_vm1, %v1431_v13, %v1445_v8  ;;  %v1443_v22 = vrot.slane %v1431_v13, 4  ;;  %v1456_v23 = vsel %vm411_vm1, %v1455_v16, %v1436_v3 }
 0x41f   : > { %v1454_v24 = vperm.slane %v1446_v18, %v2254_v41  ;;  %v1471_v14 = vrot.slane %v1466_v17, 4  ;;  %v1462_v25 = vperm.slane %v1456_v23, %v2254_v41 }
 0x420   : > { %v1444_v26 = vsel %vm411_vm1, %v1443_v22, %v1425_v19 }
 0x421   : > { %v1472_v28 = vsel %vm411_vm1, %v1471_v14, %v1454_v24  ;;  %v1473_v27 = vrot.slane %v1454_v24, 4  ;;  %v1450_v29 = vperm.slane %v1444_v26, %v2254_v41  ;;  %v1467_v30 = vrot.slane %v1462_v25, 4  ;;  %v1492_v41 = vld [vmem:[#allocation10 + $0x8] sm:$0xff] }
 0x422   : > { %1480 = vrot.lane.b32.xlu2 %v1472_v28, %s2056_s12  ;;  %1516 = vmatpush.msra.mxu3 %v1492_v41 }
 0x423   : > { %v1474_v0 = vsel %vm411_vm1, %v1466_v17, %v1473_v27  ;;  %v1469_v31 = vrot.slane %v1450_v29, 4  ;;  %v1468_v33 = vsel %vm411_vm1, %v1467_v30, %v1450_v29 }
 0x424   : > { %1484 = vrot.lane.b32.xlu1 %v1474_v0, %s2057_s17  ;;  %1517 = vmatpush.msra.mxu3 %v1491_v37 }
 0x425   : > { %v1470_v34 = vsel %vm411_vm1, %v1462_v25, %v1469_v31 }
 0x426   : > { %1476 = vrot.lane.b32.xlu0 %v1470_v34, %s2058_s13 }
 0x47c   : > { %v1481_v38 = vpop.permute.xlu2 %1480 }
 0x496   : > { %v1485_v32 = vpop.permute.xlu1 %1484 }
 0x498   : > { %v1477_v4 = vpop.permute.xlu0 %1476 }
 0x499   : > { %v1487_v39 = vsel %vm631_vm2, %v1468_v33, %v1477_v4 }
 0x49a   : > { %v1488_v40 = vsel %vm1176_vm3, %v1487_v39, %v1481_v38 }
 0x49b   : > { %v1490_v36 = vsel %vm1489_vm8, %v1488_v40, %v1485_v32 }
 0x49c   : > { %1698 = vmatmul.msk.f32.vlgmr.msra.gmra.mxu3 %vm360_vm0, %v1490_v36 }
 0x51f   : > { %v1519_v43 = vpop.f32.mrf.mxu3 }
 0x520   : > { %v1520_v44 = vadd.f32 %v1813_v42, %v1519_v43 }
 0x522   : > { %1522 = vst.msk [vmem:[%s333_s20] sm:$0xff] %vm360_vm0, %v1520_v44 }
 0x523   : > { %1977 = shalt.err (!%p1974_p13)
}
 0x524   : > { %1716 = dma.vmem_to_hbm [thread:$0]  (%p2169_p2), %s1538_s14, 128, %s1540_s3, %s1524_s21  }
 0x525 PF: > { %s1551_s30 = sand.u32 1, %s2024_s18   ;;  %p1733_p0 = pnand %p1667_p6, %p2176_p5 }
 0x526   : > { %s1552_s12 = scalar_lea.sflag [#allocation6], %s1551_s30 }
 0x527   : > { %p1734_p4 = pneg %p1733_p0 }
 0x529   : > { %2019 = dma.done.wait (%p1734_p4), %s1552_s12, 128  }
 0x52a   : > { %2021 = vsyncadd (%p1734_p4), %s1552_s12, 4294967168  ;;  %s25_s23 = sadd.s32 1, %s2044_s23   ;;  %s2658_s17 = sld [smem:[#allocation18_spill]] }
 0x52b   : > { %p22_p7 = scmp.ge.s32.totalorder %s25_s23, 4   ;;  %s2659_s20 = sld [smem:[#allocation20_spill]] }
 0x52c   : > { %s2660_s26 = sld [smem:[#allocation19_spill]]  ;;  %s2661_s18 = smov %s2028_s19 }
 0x52d   : > { %s2663_s21 = smov %s2040_s22 }
 0x52e   :  { %24 = sbr.rel (!%p22_p7) target bundleno = 12 (0xc), region = 110 }
 0x530   : > { %s2662_s19 = smov %s2658_s17 }
 0x532   : > { %s2664_s22 = smov %s2660_s26 }
 0x533   :  { %1558 = vsyncpa [#allocation5], 1 }
 0x534   :  { %1560 = vsyncpa [#allocation5 + $0x1], 1 }
 0x535   :  { %1561 = vsyncpa [#allocation8], 1 }
 0x536   :  { %1563 = vsyncpa [#allocation8 + $0x1], 1 }
 0x537   :  { %1564 = vsyncpa [#allocation11], 1 }
 0x538   :  { %1565 = vsyncpa [#allocation6], 1 }
 0x539   :  { %1567 = vsyncpa [#allocation6 + $0x1], 1 }

</bundles_post_ra>
